<compile_context>
chip_gen: v7x
topology: tpu7x:2x2x1
jax: 0.10.0
libtpu: 0.0.40
codegen_flags: <defaults>
</compile_context>

<pallas_src>
import functools

import jax
import jax.numpy as jnp
from jax.experimental import pallas as pl
from jax.experimental.pallas import tpu as pltpu

HIDDEN = 256
LANE = 128
TILE_CAP = 2048
VMEM_LIMIT = 32 * 1024 * 1024

_PREP_KEYS = ("w1", "b1", "w2", "b2", "w3", "b3", "w4", "b4", "w5", "b5",
              "wva", "bva", "wq", "bq")


def _round_up(x, m):
    return ((x + m - 1) // m) * m


# ----------------------------------------------------------------------------
# Pallas kernel: 5-layer trunk + fused value||advantage layer + folded head.
# Pure MXU work per tile; no cross-lane reductions in the epilogue.
# ----------------------------------------------------------------------------
def _mhdqn_kernel(x_ref,
                  w1_ref, b1_ref, w2_ref, b2_ref, w3_ref, b3_ref,
                  w4_ref, b4_ref, w5_ref, b5_ref,
                  wva_ref, bva_ref, wq_ref, bq_ref,
                  out_ref):
    def dense(h_bf16, w_ref, b_ref):
        # bf16 MXU inputs, f32 accumulate, f32 bias add.
        return jnp.dot(h_bf16, w_ref[...],
                       preferred_element_type=jnp.float32) + b_ref[...]

    def dense_relu(h_bf16, w_ref, b_ref):
        return jnp.maximum(dense(h_bf16, w_ref, b_ref), 0.0).astype(jnp.bfloat16)

    h = x_ref[...]                               # (TB, num_inputs) bf16
    h = dense_relu(h, w1_ref, b1_ref)
    h = dense_relu(h, w2_ref, b2_ref)
    h = dense_relu(h, w3_ref, b3_ref)
    h = dense_relu(h, w4_ref, b4_ref)
    h = dense_relu(h, w5_ref, b5_ref)            # (TB, 256)

    # Fused value||advantage first layer: (TB, 256) @ (256, 512).
    va = dense_relu(h, wva_ref, bva_ref)         # (TB, 512)

    # Dueling combine is pre-folded into (wq, bq): columns 0..A-1 are the final
    # Q-values of the selected head; remaining lanes are zero padding.
    out_ref[...] = dense(va, wq_ref, bq_ref)     # (TB, 128) f32, lane-dense


# ----------------------------------------------------------------------------
# One-time parameter preparation (hoisted out of the per-call path).
# ----------------------------------------------------------------------------
def prepare_params(params, head_index, num_actions):
    hi = int(head_index)
    A = int(num_actions)
    H = HIDDEN
    a_pad = _round_up(A, LANE)

    bf16 = lambda w: w.astype(jnp.bfloat16)
    prep = {}
    for i in range(1, 6):
        prep[f"w{i}"] = bf16(params[f"w{i}"])
        prep[f"b{i}"] = params[f"b{i}"].astype(jnp.float32)

    # Fused value||advantage first layer: (H, 2H) / (1, 2H).
    prep["wva"] = bf16(jnp.concatenate([params["wv1"], params["wa1"]], axis=1))
    prep["bva"] = jnp.concatenate([params["bv1"], params["ba1"]],
                                  axis=1).astype(jnp.float32)

    # Fold the dueling combine into the head weights (done in f32, cast once):
    #   out[:, j] = value + adv_j - mean_k(adv_k)
    # value rows act on va[:, :H], advantage rows on va[:, H:].
    wv2 = params["wv2"][:, hi:hi + 1]                      # (H, 1)
    wa2 = params["wa2"][:, hi * A:(hi + 1) * A]            # (H, A)
    bv2 = params["bv2"][:, hi:hi + 1]                      # (1, 1)
    ba2 = params["ba2"][:, hi * A:(hi + 1) * A]            # (1, A)
    wa2_c = wa2 - wa2.mean(axis=1, keepdims=True)
    ba2_c = ba2 - ba2.mean(axis=1, keepdims=True)

    wq = jnp.zeros((2 * H, a_pad), jnp.float32)
    wq = wq.at[:H, :A].set(jnp.broadcast_to(wv2, (H, A)))
    wq = wq.at[H:, :A].set(wa2_c)
    bq = jnp.zeros((1, a_pad), jnp.float32)
    bq = bq.at[:, :A].set(bv2 + ba2_c)

    prep["wq"] = bf16(wq)
    prep["bq"] = bq
    return jax.tree_util.tree_map(jnp.asarray, prep)


# ----------------------------------------------------------------------------
# Batch tiling: tile count first (bounds padding), 256-row alignment, >=2 grid
# steps for large batches (v7x megacore), VMEM-budgeted tile size.
# ----------------------------------------------------------------------------
def _choose_tiling(batch, num_inputs):
    if batch <= 256:
        tile_b = _round_up(batch, 8)
        return tile_b, tile_b

    def vmem_est(tb):
        act = tb * (2 * num_inputs * 2          # x bf16, double-buffered
                    + 2 * LANE * 4              # out f32, double-buffered
                    + 3 * HIDDEN * 2            # bf16 h / va live values
                    + (2 * HIDDEN + LANE) * 4)  # f32 matmul accumulators
        weights = 2 * 2 * (num_inputs * HIDDEN + 4 * HIDDEN * HIDDEN
                           + 2 * HIDDEN * HIDDEN + 2 * HIDDEN * LANE)
        return act + weights

    n = pl.cdiv(batch, TILE_CAP)
    if batch >= 512:
        n = max(n, 2)       # let the "parallel" batch axis shard on v7x's 2 TCs
    tile_b = _round_up(pl.cdiv(batch, n), 256)
    while tile_b > 256 and vmem_est(tile_b) > 24 * 1024 * 1024:
        tile_b -= 256
    n = pl.cdiv(batch, tile_b)
    return tile_b, n * tile_b


# ----------------------------------------------------------------------------
# Jitted forward: cast/pad x, batch-gridded pallas_call, slice the A columns.
# ----------------------------------------------------------------------------
@functools.partial(jax.jit, static_argnames=("num_actions",))
def mhdqn_forward(x, prep, num_actions):
    A = int(num_actions)
    B, num_inputs = x.shape
    a_pad = prep["wq"].shape[1]
    H = HIDDEN

    tile_b, b_pad = _choose_tiling(B, num_inputs)
    grid = (b_pad // tile_b,)

    x_bf = x.astype(jnp.bfloat16)
    if b_pad != B:
        x_bf = jnp.pad(x_bf, ((0, b_pad - B), (0, 0)))

    args = [x_bf] + [prep[k] for k in _PREP_KEYS]

    # TODO(synk): mark the resident weight specs pipeline_mode=pl.Buffered(1)
    # once single-buffered pallas_call inputs are confirmed stable in this JAX
    # version; saves ~0.9 MiB of duplicated VMEM (not load-bearing here).
    in_specs = [pl.BlockSpec((tile_b, num_inputs), lambda i: (i, 0))]
    in_specs += [pl.BlockSpec(prep[k].shape, lambda i: (0, 0)) for k in _PREP_KEYS]
    out_specs = pl.BlockSpec((tile_b, a_pad), lambda i: (i, 0))

    flops = 2 * b_pad * (num_inputs * H + 4 * H * H + H * 2 * H + 2 * H * a_pad)
    bytes_accessed = (x_bf.size * 2
                      + b_pad * a_pad * 4
                      + sum(int(prep[k].size) * prep[k].dtype.itemsize
                            for k in _PREP_KEYS))
    cost = pl.CostEstimate(flops=int(flops), transcendentals=0,
                           bytes_accessed=int(bytes_accessed))

    out = pl.pallas_call(
        _mhdqn_kernel,
        out_shape=jax.ShapeDtypeStruct((b_pad, a_pad), jnp.float32),
        grid=grid,
        in_specs=in_specs,
        out_specs=out_specs,
        compiler_params=pltpu.CompilerParams(
            dimension_semantics=("parallel",),
            vmem_limit_bytes=VMEM_LIMIT),
        cost_estimate=cost,
    )(*args)

    # Final Q-values live in the first A lanes of the lane-dense slab.
    return out[:B, :A]


# ----------------------------------------------------------------------------
# Deterministic parameter construction (matches module __init__ shapes).
# ----------------------------------------------------------------------------
def _linear_params(key, in_f, out_f):
    k_w, k_b = jax.random.split(key)
    bound = 1.0 / jnp.sqrt(in_f)
    w = jax.random.uniform(k_w, (in_f, out_f), jnp.float32, -bound, bound)
    b = jax.random.uniform(k_b, (1, out_f), jnp.float32, -bound, bound)
    return w, b


def _noisy_linear_params(key, in_f, out_f, std_init=0.4):
    """Effective (noise-applied) weights of a factorized-Gaussian NoisyLinear."""
    k_mu_w, k_mu_b, k_ein, k_eout = jax.random.split(key, 4)
    mu_range = 1.0 / jnp.sqrt(in_f)
    w_mu = jax.random.uniform(k_mu_w, (in_f, out_f), jnp.float32, -mu_range, mu_range)
    b_mu = jax.random.uniform(k_mu_b, (1, out_f), jnp.float32, -mu_range, mu_range)
    w_sigma = jnp.full((in_f, out_f), std_init / jnp.sqrt(in_f), jnp.float32)
    b_sigma = jnp.full((1, out_f), std_init / jnp.sqrt(in_f), jnp.float32)

    def f(e):
        return jnp.sign(e) * jnp.sqrt(jnp.abs(e))

    eps_in = f(jax.random.normal(k_ein, (in_f,), jnp.float32))
    eps_out = f(jax.random.normal(k_eout, (out_f,), jnp.float32))
    w_eps = jnp.outer(eps_in, eps_out)
    b_eps = eps_out[None, :]
    return w_mu + w_sigma * w_eps, b_mu + b_sigma * b_eps


def make_params(key, num_inputs, num_actions, num_head):
    keys = jax.random.split(key, 9)
    p = {}
    p["w1"], p["b1"] = _linear_params(keys[0], num_inputs, HIDDEN)
    p["w2"], p["b2"] = _linear_params(keys[1], HIDDEN, HIDDEN)
    p["w3"], p["b3"] = _linear_params(keys[2], HIDDEN, HIDDEN)
    p["w4"], p["b4"] = _linear_params(keys[3], HIDDEN, HIDDEN)
    p["w5"], p["b5"] = _linear_params(keys[4], HIDDEN, HIDDEN)
    p["wv1"], p["bv1"] = _noisy_linear_params(keys[5], HIDDEN, HIDDEN)
    p["wv2"], p["bv2"] = _noisy_linear_params(keys[6], HIDDEN, num_head)
    p["wa1"], p["ba1"] = _noisy_linear_params(keys[7], HIDDEN, HIDDEN)
    p["wa2"], p["ba2"] = _noisy_linear_params(keys[8], HIDDEN, num_head * num_actions)
    return p


# ----------------------------------------------------------------------------
# References for validation.
# ----------------------------------------------------------------------------
def mhdqn_reference_f32(x, p, head_index, num_actions):
    relu = lambda z: jnp.maximum(z, 0.0)
    h = x
    for i in range(1, 6):
        h = relu(h @ p[f"w{i}"] + p[f"b{i}"])
    v = relu(h @ p["wv1"] + p["bv1"])
    value = (v @ p["wv2"] + p["bv2"])[:, head_index:head_index + 1]
    a = relu(h @ p["wa1"] + p["ba1"])
    adv_full = a @ p["wa2"] + p["ba2"]
    adv = adv_full[:, head_index * num_actions:(head_index + 1) * num_actions]
    return value + adv - adv.mean(axis=1, keepdims=True)


def mhdqn_reference_prepared(x, prep, num_actions):
    """Plain-JAX mirror of the kernel's bf16/f32 numerics on prepared weights."""
    def dense(h, w, b):
        return jnp.dot(h, w, preferred_element_type=jnp.float32) + b
    relu_bf16 = lambda z: jnp.maximum(z, 0.0).astype(jnp.bfloat16)
    h = x.astype(jnp.bfloat16)
    for i in range(1, 6):
        h = relu_bf16(dense(h, prep[f"w{i}"], prep[f"b{i}"]))
    va = relu_bf16(dense(h, prep["wva"], prep["bva"]))
    q = dense(va, prep["wq"], prep["bq"])
    return q[:, :num_actions]


if __name__ == "__main__":
    batch = 2
    num_inputs = 8
    num_actions = 4
    num_head = 4
    head_index = 1

    key = jax.random.PRNGKey(0)
    k_params, k_x = jax.random.split(key)
    params = make_params(k_params, num_inputs, num_actions, num_head)
    x = jax.random.normal(k_x, (batch, num_inputs), jnp.float32)

    prep = prepare_params(params, head_index, num_actions)   # one-time prep
    out = mhdqn_forward(x, prep, num_actions=num_actions)
    out = jax.block_until_ready(out)
    assert out.shape == (batch, num_actions), out.shape

    ref_prep = mhdqn_reference_prepared(x, prep, num_actions)
    ref_f32 = mhdqn_reference_f32(x, params, head_index, num_actions)
    assert jnp.allclose(out, ref_prep, rtol=1e-2, atol=1e-2), (out, ref_prep)
    assert jnp.allclose(out, ref_f32, rtol=1e-1, atol=1e-1), (out, ref_f32)

    print("KERNEL_OK")
</pallas_src>

<mosaic_0001>
module attributes {stable_mosaic.version = 11 : i64} {
  func.func @_mhdqn_kernel(%arg0: i32, %arg1: memref<8x8xbf16, #tpu.memory_space<vmem>>, %arg2: memref<8x256xbf16, #tpu.memory_space<vmem>>, %arg3: memref<1x256xf32, #tpu.memory_space<vmem>>, %arg4: memref<256x256xbf16, #tpu.memory_space<vmem>>, %arg5: memref<1x256xf32, #tpu.memory_space<vmem>>, %arg6: memref<256x256xbf16, #tpu.memory_space<vmem>>, %arg7: memref<1x256xf32, #tpu.memory_space<vmem>>, %arg8: memref<256x256xbf16, #tpu.memory_space<vmem>>, %arg9: memref<1x256xf32, #tpu.memory_space<vmem>>, %arg10: memref<256x256xbf16, #tpu.memory_space<vmem>>, %arg11: memref<1x256xf32, #tpu.memory_space<vmem>>, %arg12: memref<256x512xbf16, #tpu.memory_space<vmem>>, %arg13: memref<1x512xf32, #tpu.memory_space<vmem>>, %arg14: memref<512x128xbf16, #tpu.memory_space<vmem>>, %arg15: memref<1x128xf32, #tpu.memory_space<vmem>>, %arg16: memref<8x128xf32, #tpu.memory_space<vmem>>) attributes {dimension_semantics = [#tpu.dimension_semantics<parallel>], iteration_bounds = array<i64: 1>, scalar_prefetch = 0 : i64, scratch_operands = 0 : i64, tpu.core_type = #tpu.core_type<tc>, window_params = [{transform_indices = @transform_0, window_bounds = array<i64: 8, 8>}, {pipeline_mode = #tpu.pipeline_mode<synchronous>, transform_indices = @transform_1, window_bounds = array<i64: 8, 256>}, {pipeline_mode = #tpu.pipeline_mode<synchronous>, transform_indices = @transform_2, window_bounds = array<i64: 1, 256>}, {pipeline_mode = #tpu.pipeline_mode<synchronous>, transform_indices = @transform_3, window_bounds = array<i64: 256, 256>}, {pipeline_mode = #tpu.pipeline_mode<synchronous>, transform_indices = @transform_4, window_bounds = array<i64: 1, 256>}, {pipeline_mode = #tpu.pipeline_mode<synchronous>, transform_indices = @transform_5, window_bounds = array<i64: 256, 256>}, {pipeline_mode = #tpu.pipeline_mode<synchronous>, transform_indices = @transform_6, window_bounds = array<i64: 1, 256>}, {pipeline_mode = #tpu.pipeline_mode<synchronous>, transform_indices = @transform_7, window_bounds = array<i64: 256, 256>}, {pipeline_mode = #tpu.pipeline_mode<synchronous>, transform_indices = @transform_8, window_bounds = array<i64: 1, 256>}, {pipeline_mode = #tpu.pipeline_mode<synchronous>, transform_indices = @transform_9, window_bounds = array<i64: 256, 256>}, {pipeline_mode = #tpu.pipeline_mode<synchronous>, transform_indices = @transform_10, window_bounds = array<i64: 1, 256>}, {pipeline_mode = #tpu.pipeline_mode<synchronous>, transform_indices = @transform_11, window_bounds = array<i64: 256, 512>}, {pipeline_mode = #tpu.pipeline_mode<synchronous>, transform_indices = @transform_12, window_bounds = array<i64: 1, 512>}, {pipeline_mode = #tpu.pipeline_mode<synchronous>, transform_indices = @transform_13, window_bounds = array<i64: 512, 128>}, {pipeline_mode = #tpu.pipeline_mode<synchronous>, transform_indices = @transform_14, window_bounds = array<i64: 1, 128>}, {transform_indices = @transform_15, window_bounds = array<i64: 8, 128>}]} {
    %c0 = arith.constant 0 : index
    %c0_0 = arith.constant 0 : index
    %0 = vector.load %arg1[%c0, %c0_0] : memref<8x8xbf16, #tpu.memory_space<vmem>>, vector<8x8xbf16>
    %c0_1 = arith.constant 0 : index
    %c0_2 = arith.constant 0 : index
    %1 = vector.load %arg2[%c0_1, %c0_2] : memref<8x256xbf16, #tpu.memory_space<vmem>>, vector<8x256xbf16>
    %cst = arith.constant dense<0.000000e+00> : vector<8x256xf32>
    %2 = tpu.matmul %0, %1, %cst {dimension_numbers = #tpu.dot_dimension_numbers<[1], [0], [0], [1], [0, 0, 1, 1], [], []>} : vector<8x8xbf16>, vector<8x256xbf16>, vector<8x256xf32> -> vector<8x256xf32>
    %c0_3 = arith.constant 0 : index
    %c0_4 = arith.constant 0 : index
    %3 = vector.load %arg3[%c0_3, %c0_4] : memref<1x256xf32, #tpu.memory_space<vmem>>, vector<1x256xf32>
    %4 = vector.broadcast %3 : vector<1x256xf32> to vector<8x256xf32>
    %5 = arith.addf %2, %4 : vector<8x256xf32>
    %cst_5 = arith.constant 0.000000e+00 : f32
    %6 = vector.broadcast %cst_5 : f32 to vector<8x256xf32>
    %7 = arith.maximumf %5, %6 : vector<8x256xf32>
    %8 = arith.truncf %7 : vector<8x256xf32> to vector<8x256xbf16>
    %c0_6 = arith.constant 0 : index
    %c0_7 = arith.constant 0 : index
    %9 = vector.load %arg4[%c0_6, %c0_7] : memref<256x256xbf16, #tpu.memory_space<vmem>>, vector<256x256xbf16>
    %cst_8 = arith.constant dense<0.000000e+00> : vector<8x256xf32>
    %10 = tpu.matmul %8, %9, %cst_8 {dimension_numbers = #tpu.dot_dimension_numbers<[1], [0], [0], [1], [0, 0, 1, 1], [], []>} : vector<8x256xbf16>, vector<256x256xbf16>, vector<8x256xf32> -> vector<8x256xf32>
    %c0_9 = arith.constant 0 : index
    %c0_10 = arith.constant 0 : index
    %11 = vector.load %arg5[%c0_9, %c0_10] : memref<1x256xf32, #tpu.memory_space<vmem>>, vector<1x256xf32>
    %12 = vector.broadcast %11 : vector<1x256xf32> to vector<8x256xf32>
    %13 = arith.addf %10, %12 : vector<8x256xf32>
    %cst_11 = arith.constant 0.000000e+00 : f32
    %14 = vector.broadcast %cst_11 : f32 to vector<8x256xf32>
    %15 = arith.maximumf %13, %14 : vector<8x256xf32>
    %16 = arith.truncf %15 : vector<8x256xf32> to vector<8x256xbf16>
    %c0_12 = arith.constant 0 : index
    %c0_13 = arith.constant 0 : index
    %17 = vector.load %arg6[%c0_12, %c0_13] : memref<256x256xbf16, #tpu.memory_space<vmem>>, vector<256x256xbf16>
    %cst_14 = arith.constant dense<0.000000e+00> : vector<8x256xf32>
    %18 = tpu.matmul %16, %17, %cst_14 {dimension_numbers = #tpu.dot_dimension_numbers<[1], [0], [0], [1], [0, 0, 1, 1], [], []>} : vector<8x256xbf16>, vector<256x256xbf16>, vector<8x256xf32> -> vector<8x256xf32>
    %c0_15 = arith.constant 0 : index
    %c0_16 = arith.constant 0 : index
    %19 = vector.load %arg7[%c0_15, %c0_16] : memref<1x256xf32, #tpu.memory_space<vmem>>, vector<1x256xf32>
    %20 = vector.broadcast %19 : vector<1x256xf32> to vector<8x256xf32>
    %21 = arith.addf %18, %20 : vector<8x256xf32>
    %cst_17 = arith.constant 0.000000e+00 : f32
    %22 = vector.broadcast %cst_17 : f32 to vector<8x256xf32>
    %23 = arith.maximumf %21, %22 : vector<8x256xf32>
    %24 = arith.truncf %23 : vector<8x256xf32> to vector<8x256xbf16>
    %c0_18 = arith.constant 0 : index
    %c0_19 = arith.constant 0 : index
    %25 = vector.load %arg8[%c0_18, %c0_19] : memref<256x256xbf16, #tpu.memory_space<vmem>>, vector<256x256xbf16>
    %cst_20 = arith.constant dense<0.000000e+00> : vector<8x256xf32>
    %26 = tpu.matmul %24, %25, %cst_20 {dimension_numbers = #tpu.dot_dimension_numbers<[1], [0], [0], [1], [0, 0, 1, 1], [], []>} : vector<8x256xbf16>, vector<256x256xbf16>, vector<8x256xf32> -> vector<8x256xf32>
    %c0_21 = arith.constant 0 : index
    %c0_22 = arith.constant 0 : index
    %27 = vector.load %arg9[%c0_21, %c0_22] : memref<1x256xf32, #tpu.memory_space<vmem>>, vector<1x256xf32>
    %28 = vector.broadcast %27 : vector<1x256xf32> to vector<8x256xf32>
    %29 = arith.addf %26, %28 : vector<8x256xf32>
    %cst_23 = arith.constant 0.000000e+00 : f32
    %30 = vector.broadcast %cst_23 : f32 to vector<8x256xf32>
    %31 = arith.maximumf %29, %30 : vector<8x256xf32>
    %32 = arith.truncf %31 : vector<8x256xf32> to vector<8x256xbf16>
    %c0_24 = arith.constant 0 : index
    %c0_25 = arith.constant 0 : index
    %33 = vector.load %arg10[%c0_24, %c0_25] : memref<256x256xbf16, #tpu.memory_space<vmem>>, vector<256x256xbf16>
    %cst_26 = arith.constant dense<0.000000e+00> : vector<8x256xf32>
    %34 = tpu.matmul %32, %33, %cst_26 {dimension_numbers = #tpu.dot_dimension_numbers<[1], [0], [0], [1], [0, 0, 1, 1], [], []>} : vector<8x256xbf16>, vector<256x256xbf16>, vector<8x256xf32> -> vector<8x256xf32>
    %c0_27 = arith.constant 0 : index
    %c0_28 = arith.constant 0 : index
    %35 = vector.load %arg11[%c0_27, %c0_28] : memref<1x256xf32, #tpu.memory_space<vmem>>, vector<1x256xf32>
    %36 = vector.broadcast %35 : vector<1x256xf32> to vector<8x256xf32>
    %37 = arith.addf %34, %36 : vector<8x256xf32>
    %cst_29 = arith.constant 0.000000e+00 : f32
    %38 = vector.broadcast %cst_29 : f32 to vector<8x256xf32>
    %39 = arith.maximumf %37, %38 : vector<8x256xf32>
    %40 = arith.truncf %39 : vector<8x256xf32> to vector<8x256xbf16>
    %c0_30 = arith.constant 0 : index
    %c0_31 = arith.constant 0 : index
    %41 = vector.load %arg12[%c0_30, %c0_31] : memref<256x512xbf16, #tpu.memory_space<vmem>>, vector<256x512xbf16>
    %cst_32 = arith.constant dense<0.000000e+00> : vector<8x512xf32>
    %42 = tpu.matmul %40, %41, %cst_32 {dimension_numbers = #tpu.dot_dimension_numbers<[1], [0], [0], [1], [0, 0, 1, 1], [], []>} : vector<8x256xbf16>, vector<256x512xbf16>, vector<8x512xf32> -> vector<8x512xf32>
    %c0_33 = arith.constant 0 : index
    %c0_34 = arith.constant 0 : index
    %43 = vector.load %arg13[%c0_33, %c0_34] : memref<1x512xf32, #tpu.memory_space<vmem>>, vector<1x512xf32>
    %44 = vector.broadcast %43 : vector<1x512xf32> to vector<8x512xf32>
    %45 = arith.addf %42, %44 : vector<8x512xf32>
    %cst_35 = arith.constant 0.000000e+00 : f32
    %46 = vector.broadcast %cst_35 : f32 to vector<8x512xf32>
    %47 = arith.maximumf %45, %46 : vector<8x512xf32>
    %48 = arith.truncf %47 : vector<8x512xf32> to vector<8x512xbf16>
    %c0_36 = arith.constant 0 : index
    %c0_37 = arith.constant 0 : index
    %49 = vector.load %arg14[%c0_36, %c0_37] : memref<512x128xbf16, #tpu.memory_space<vmem>>, vector<512x128xbf16>
    %cst_38 = arith.constant dense<0.000000e+00> : vector<8x128xf32>
    %50 = tpu.matmul %48, %49, %cst_38 {dimension_numbers = #tpu.dot_dimension_numbers<[1], [0], [0], [1], [0, 0, 1, 1], [], []>} : vector<8x512xbf16>, vector<512x128xbf16>, vector<8x128xf32> -> vector<8x128xf32>
    %c0_39 = arith.constant 0 : index
    %c0_40 = arith.constant 0 : index
    %51 = vector.load %arg15[%c0_39, %c0_40] : memref<1x128xf32, #tpu.memory_space<vmem>>, vector<1x128xf32>
    %52 = vector.broadcast %51 : vector<1x128xf32> to vector<8x128xf32>
    %53 = arith.addf %50, %52 : vector<8x128xf32>
    %c0_41 = arith.constant 0 : index
    %c0_42 = arith.constant 0 : index
    %54 = vector.load %arg16[%c0_41, %c0_42] : memref<8x128xf32, #tpu.memory_space<vmem>>, vector<8x128xf32>
    tpu.vector_store %arg16[%c0_41, %c0_42], %53 {strides = array<i32>} : memref<8x128xf32, #tpu.memory_space<vmem>>, vector<8x128xf32>,
    return
  }
  func.func @transform_0(%arg0: i32) -> (i32, i32) {
    %c0_i32 = arith.constant 0 : i32
    %c0_i32_0 = arith.constant 0 : i32
    return %arg0, %c0_i32 : i32, i32
  }
  func.func @transform_1(%arg0: i32) -> (i32, i32) {
    %c0_i32 = arith.constant 0 : i32
    %c0_i32_0 = arith.constant 0 : i32
    %c0_i32_1 = arith.constant 0 : i32
    return %c0_i32, %c0_i32_0 : i32, i32
  }
  func.func @transform_2(%arg0: i32) -> (i32, i32) {
    %c0_i32 = arith.constant 0 : i32
    %c0_i32_0 = arith.constant 0 : i32
    %c0_i32_1 = arith.constant 0 : i32
    return %c0_i32, %c0_i32_0 : i32, i32
  }
  func.func @transform_3(%arg0: i32) -> (i32, i32) {
    %c0_i32 = arith.constant 0 : i32
    %c0_i32_0 = arith.constant 0 : i32
    %c0_i32_1 = arith.constant 0 : i32
    return %c0_i32, %c0_i32_0 : i32, i32
  }
  func.func @transform_4(%arg0: i32) -> (i32, i32) {
    %c0_i32 = arith.constant 0 : i32
    %c0_i32_0 = arith.constant 0 : i32
    %c0_i32_1 = arith.constant 0 : i32
    return %c0_i32, %c0_i32_0 : i32, i32
  }
  func.func @transform_5(%arg0: i32) -> (i32, i32) {
    %c0_i32 = arith.constant 0 : i32
    %c0_i32_0 = arith.constant 0 : i32
    %c0_i32_1 = arith.constant 0 : i32
    return %c0_i32, %c0_i32_0 : i32, i32
  }
  func.func @transform_6(%arg0: i32) -> (i32, i32) {
    %c0_i32 = arith.constant 0 : i32
    %c0_i32_0 = arith.constant 0 : i32
    %c0_i32_1 = arith.constant 0 : i32
    return %c0_i32, %c0_i32_0 : i32, i32
  }
  func.func @transform_7(%arg0: i32) -> (i32, i32) {
    %c0_i32 = arith.constant 0 : i32
    %c0_i32_0 = arith.constant 0 : i32
    %c0_i32_1 = arith.constant 0 : i32
    return %c0_i32, %c0_i32_0 : i32, i32
  }
  func.func @transform_8(%arg0: i32) -> (i32, i32) {
    %c0_i32 = arith.constant 0 : i32
    %c0_i32_0 = arith.constant 0 : i32
    %c0_i32_1 = arith.constant 0 : i32
    return %c0_i32, %c0_i32_0 : i32, i32
  }
  func.func @transform_9(%arg0: i32) -> (i32, i32) {
    %c0_i32 = arith.constant 0 : i32
    %c0_i32_0 = arith.constant 0 : i32
    %c0_i32_1 = arith.constant 0 : i32
    return %c0_i32, %c0_i32_0 : i32, i32
  }
  func.func @transform_10(%arg0: i32) -> (i32, i32) {
    %c0_i32 = arith.constant 0 : i32
    %c0_i32_0 = arith.constant 0 : i32
    %c0_i32_1 = arith.constant 0 : i32
    return %c0_i32, %c0_i32_0 : i32, i32
  }
  func.func @transform_11(%arg0: i32) -> (i32, i32) {
    %c0_i32 = arith.constant 0 : i32
    %c0_i32_0 = arith.constant 0 : i32
    %c0_i32_1 = arith.constant 0 : i32
    return %c0_i32, %c0_i32_0 : i32, i32
  }
  func.func @transform_12(%arg0: i32) -> (i32, i32) {
    %c0_i32 = arith.constant 0 : i32
    %c0_i32_0 = arith.constant 0 : i32
    %c0_i32_1 = arith.constant 0 : i32
    return %c0_i32, %c0_i32_0 : i32, i32
  }
  func.func @transform_13(%arg0: i32) -> (i32, i32) {
    %c0_i32 = arith.constant 0 : i32
    %c0_i32_0 = arith.constant 0 : i32
    %c0_i32_1 = arith.constant 0 : i32
    return %c0_i32, %c0_i32_0 : i32, i32
  }
  func.func @transform_14(%arg0: i32) -> (i32, i32) {
    %c0_i32 = arith.constant 0 : i32
    %c0_i32_0 = arith.constant 0 : i32
    %c0_i32_1 = arith.constant 0 : i32
    return %c0_i32, %c0_i32_0 : i32, i32
  }
  func.func @transform_15(%arg0: i32) -> (i32, i32) {
    %c0_i32 = arith.constant 0 : i32
    %c0_i32_0 = arith.constant 0 : i32
    return %arg0, %c0_i32 : i32, i32
  }
}

</mosaic_0001>

<bundles_post_ra>
// kernel: mhdqn_forward.1
= control target key start
LH: loop header
LB: loop body
LE: loop exit
PB: predicated region body
PF: predicated region fallthrough
CT: control target
= control target key end

     0   :  { %20 = vsyncpa [#allocation3], 0  ;;  %s3043_s0 = inlined_call_operand.vmem [shape: bf16[8,8], index: 0, kind: input, shape index: {}]   ;;  %s3044_s1 = inlined_call_operand.vmem [shape: bf16[8,256], index: 1, kind: input, shape index: {}]   ;;  %s3045_s2 = inlined_call_operand.vmem [shape: f32[1,256], index: 2, kind: input, shape index: {}]   ;;  %s3046_s3 = inlined_call_operand.hbm [shape: bf16[256,256], index: 3, kind: input, shape index: {}]   ;;  %s3047_s4 = inlined_call_operand.vmem [shape: f32[1,256], index: 4, kind: input, shape index: {}]   ;;  %s3048_s5 = inlined_call_operand.hbm [shape: bf16[256,256], index: 5, kind: input, shape index: {}]   ;;  %s3049_s6 = inlined_call_operand.vmem [shape: f32[1,256], index: 6, kind: input, shape index: {}]   ;;  %s3050_s7 = inlined_call_operand.hbm [shape: bf16[256,256], index: 7, kind: input, shape index: {}]   ;;  %s3051_s8 = inlined_call_operand.vmem [shape: f32[1,256], index: 8, kind: input, shape index: {}]   ;;  %s3052_s9 = inlined_call_operand.hbm [shape: bf16[256,256], index: 9, kind: input, shape index: {}]   ;;  %s3053_s10 = inlined_call_operand.vmem [shape: f32[1,256], index: 10, kind: input, shape index: {}]   ;;  %s3054_s11 = inlined_call_operand.hbm [shape: bf16[256,512], index: 11, kind: input, shape index: {}]   ;;  %s3055_s12 = inlined_call_operand.vmem [shape: f32[1,512], index: 12, kind: input, shape index: {}]   ;;  %s3056_s13 = inlined_call_operand.hbm [shape: bf16[512,128], index: 13, kind: input, shape index: {}]   ;;  %s3057_s14 = inlined_call_operand.vmem [shape: f32[1,128], index: 14, kind: input, shape index: {}]   ;;  %s3058_s15 = inlined_call_operand.vmem [shape: f32[8,128], index: 15, kind: output, shape index: {}]  }
   0x1   :  { %21 = vsyncpa [#allocation5], 0 }
   0x2   :  { %22 = vsyncpa [#allocation8], 0 }
   0x3   :  { %23 = vsyncpa [#allocation11], 0  ;;  %s2800_s18 = smov [#allocation4]   ;;  %s2801_s20 = smov [#allocation7]  }
   0x4   :  { %s49_s19 = sshll.u32 %s2800_s18, 4  ;;  %s77_s21 = sshll.u32 %s2801_s20, 4  ;;  %s50_s19 = int_to_ptr.vmem [resolvable:$true] %s49_s19  ;;  %s2893_s21 = int_to_ptr.vmem [resolvable:$true] %s77_s21 }
   0x5   :  { %s2660_s24 = scalar_lea.hbm %s3048_s5, 4096 }
   0x6   :  { %p2661_p0 = scmp.ne.s32.totalorder %s3048_s5, %s2660_s24  ;;  %p2664_p1 = scmp.lt.u32.totalorder %s2660_s24, %s3048_s5 }
   0x8   :  { %p2666_p2 = pnand %p2664_p1, %p2661_p0 }
   0xa   :  { %2669 = shalt.err (!%p2666_p2)
}
   0xb   :  { %s2670_s29 = scalar_lea.vmem %s50_s19, 4096  ;;  %p2675_p4 = scmp.lt.s32.totalorder %s50_s19, %s50_s19 }
   0xc   :  { %p2671_p3 = scmp.ne.s32.totalorder %s50_s19, %s2670_s29  ;;  %p2676_p5 = scmp.lt.s32.totalorder %s2670_s29, %s2670_s29 }
   0xe   :  { %p2677_p6 = por %p2676_p5, %p2675_p4 }
  0x10   :  { %p2678_p7 = pnand %p2677_p6, %p2671_p3 }
  0x12   :  { %2681 = shalt.err (!%p2678_p7)
}
  0x13   :  { %s2802_s30 = smov 128   ;;  %s2803_s16 = smov 8  }
  0x14   :  { %55 = dma.hbm_to_vmem [thread:$0]  %s3048_s5, 4096, %s50_s19, [#allocation5], %s2802_s30, %s2802_s30, %s2803_s16  }
  0x15   :  { %s2682_s23 = scalar_lea.hbm %s3052_s9, 4096 }
  0x16   :  { %p2683_p8 = scmp.ne.s32.totalorder %s3052_s9, %s2682_s23  ;;  %p2686_p9 = scmp.lt.u32.totalorder %s2682_s23, %s3052_s9 }
  0x18   :  { %p2688_p10 = pnand %p2686_p9, %p2683_p8 }
  0x1a   :  { %2691 = shalt.err (!%p2688_p10)
}
  0x1b   :  { %s2692_s28 = scalar_lea.vmem %s2893_s21, 4096  ;;  %p2697_p12 = scmp.lt.s32.totalorder %s2893_s21, %s2893_s21 }
  0x1c   :  { %p2693_p11 = scmp.ne.s32.totalorder %s2893_s21, %s2692_s28  ;;  %p2698_p13 = scmp.lt.s32.totalorder %s2692_s28, %s2692_s28 }
  0x1e   :  { %p2699_p0 = por %p2698_p13, %p2697_p12 }
  0x20   :  { %p2700_p1 = pnand %p2699_p0, %p2693_p11 }
  0x22   :  { %2703 = shalt.err (!%p2700_p1)
}
  0x23   :  { %83 = dma.hbm_to_vmem [thread:$0]  %s3052_s9, 4096, %s2893_s21, [#allocation8], %s2802_s30, %s2802_s30, %s2803_s16  }
  0x24   :  { %s2804_s29 = smov [#allocation2]   ;;  %s2805_s18 = smov [#allocation6]  }
  0x25   :  { %s35_s17 = sshll.u32 %s2804_s29, 4  ;;  %s63_s20 = sshll.u32 %s2805_s18, 4  ;;  %s36_s17 = int_to_ptr.vmem [resolvable:$true] %s35_s17  ;;  %s2930_s20 = int_to_ptr.vmem [resolvable:$true] %s63_s20 }
  0x26   :  { %s2704_s24 = scalar_lea.hbm %s3046_s3, 4096 }
  0x27   :  { %p2705_p2 = scmp.ne.s32.totalorder %s3046_s3, %s2704_s24  ;;  %p2708_p3 = scmp.lt.u32.totalorder %s2704_s24, %s3046_s3 }
  0x29   :  { %p2710_p4 = pnand %p2708_p3, %p2705_p2 }
  0x2b   :  { %2713 = shalt.err (!%p2710_p4)
}
  0x2c   :  { %s2714_s9 = scalar_lea.vmem %s36_s17, 4096  ;;  %p2719_p6 = scmp.lt.s32.totalorder %s36_s17, %s36_s17 }
  0x2d   :  { %p2715_p5 = scmp.ne.s32.totalorder %s36_s17, %s2714_s9  ;;  %p2720_p7 = scmp.lt.s32.totalorder %s2714_s9, %s2714_s9 }
  0x2f   :  { %p2721_p8 = por %p2720_p7, %p2719_p6 }
  0x31   :  { %p2722_p9 = pnand %p2721_p8, %p2715_p5 }
  0x33   :  { %2725 = shalt.err (!%p2722_p9)
}
  0x34   :  { %41 = dma.hbm_to_vmem [thread:$0]  %s3046_s3, 4096, %s36_s17, [#allocation3], %s2802_s30, %s2802_s30, %s2803_s16  }
  0x35   :  { %s2726_s18 = scalar_lea.hbm %s3050_s7, 4096 }
  0x36   :  { %p2727_p10 = scmp.ne.s32.totalorder %s3050_s7, %s2726_s18  ;;  %p2730_p11 = scmp.lt.u32.totalorder %s2726_s18, %s3050_s7 }
  0x38   :  { %p2732_p12 = pnand %p2730_p11, %p2727_p10 }
  0x3a   :  { %2735 = shalt.err (!%p2732_p12)
}
  0x3b   :  { %s2736_s26 = scalar_lea.vmem %s2930_s20, 4096  ;;  %p2741_p0 = scmp.lt.s32.totalorder %s2930_s20, %s2930_s20 }
  0x3c   :  { %p2737_p13 = scmp.ne.s32.totalorder %s2930_s20, %s2736_s26  ;;  %p2742_p1 = scmp.lt.s32.totalorder %s2736_s26, %s2736_s26 }
  0x3e   :  { %p2743_p2 = por %p2742_p1, %p2741_p0 }
  0x40   :  { %p2744_p3 = pnand %p2743_p2, %p2737_p13 }
  0x42   :  { %2747 = shalt.err (!%p2744_p3)
}
  0x43   :  { %69 = dma.hbm_to_vmem [thread:$0]  %s3050_s7, 4096, %s2930_s20, [#allocation5], %s2802_s30, %s2802_s30, %s2803_s16  }
  0x44   :  { %s2806_s27 = smov [#allocation9]   ;;  %s2748_s5 = scalar_lea.hbm %s3054_s11, 8192 }
  0x45   :  { %s91_s28 = sshll.u32 %s2806_s27, 4  ;;  %p2749_p4 = scmp.ne.s32.totalorder %s3054_s11, %s2748_s5  ;;  %s92_s28 = int_to_ptr.vmem [resolvable:$true] %s91_s28 }
  0x46   :  { %p2752_p5 = scmp.lt.u32.totalorder %s2748_s5, %s3054_s11 }
  0x48   :  { %p2754_p6 = pnand %p2752_p5, %p2749_p4 }
  0x4a   :  { %2757 = shalt.err (!%p2754_p6)
}
  0x4b   :  { %s2758_s23 = scalar_lea.vmem %s92_s28, 8192  ;;  %p2763_p8 = scmp.lt.s32.totalorder %s92_s28, %s92_s28 }
  0x4c   :  { %p2759_p7 = scmp.ne.s32.totalorder %s92_s28, %s2758_s23  ;;  %p2764_p9 = scmp.lt.s32.totalorder %s2758_s23, %s2758_s23 }
  0x4e   :  { %p2765_p10 = por %p2764_p9, %p2763_p8 }
  0x50   :  { %p2766_p11 = pnand %p2765_p10, %p2759_p7 }
  0x52   :  { %2769 = shalt.err (!%p2766_p11)
}
  0x53   :  { %s2807_s7 = smov 256   ;;  %s2808_s30 = smov 16  }
  0x54   :  { %97 = dma.hbm_to_vmem [thread:$0]  %s3054_s11, 8192, %s92_s28, [#allocation8], %s2807_s7, %s2807_s7, %s2808_s30  }
  0x55   :  { %s2809_s24 = smov [#allocation10]   ;;  %s2770_s17 = scalar_lea.hbm %s3056_s13, 4096 }
  0x56   :  { %s105_s25 = sshll.u32 %s2809_s24, 4  ;;  %p2771_p12 = scmp.ne.s32.totalorder %s3056_s13, %s2770_s17  ;;  %s106_s25 = int_to_ptr.vmem [resolvable:$true] %s105_s25 }
  0x57   :  { %p2774_p13 = scmp.lt.u32.totalorder %s2770_s17, %s3056_s13 }
  0x59   :  { %p2776_p0 = pnand %p2774_p13, %p2771_p12 }
  0x5b   :  { %2779 = shalt.err (!%p2776_p0)
}
  0x5c   :  { %s2780_s19 = scalar_lea.vmem %s106_s25, 4096  ;;  %p2785_p2 = scmp.lt.s32.totalorder %s106_s25, %s106_s25 }
  0x5d   :  { %p2781_p1 = scmp.ne.s32.totalorder %s106_s25, %s2780_s19  ;;  %p2786_p3 = scmp.lt.s32.totalorder %s2780_s19, %s2780_s19 }
  0x5f   :  { %p2787_p4 = por %p2786_p3, %p2785_p2 }
  0x61   :  { %p2788_p5 = pnand %p2787_p4, %p2781_p1 }
  0x63   :  { %2791 = shalt.err (!%p2788_p5)
}
  0x64   :  { %s2810_s11 = smov 64   ;;  %s2811_s28 = smov 4  }
  0x65   :  { %111 = dma.hbm_to_vmem [thread:$0]  %s3056_s13, 4096, %s106_s25, [#allocation11], %s2810_s11, %s2810_s11, %s2811_s28  }
  0x66   :  { %2792 = dma.done.wait [#allocation3], 4096  }
  0x67   :  { %2793 = vsyncadd [#allocation3], 4294963200 }
  0x68   :  { %2794 = dma.done.wait [#allocation5], 8192  }
  0x69   :  { %2795 = vsyncadd [#allocation5], 4294959104 }
  0x6a   :  { %2796 = dma.done.wait [#allocation8], 12288  }
  0x6b   :  { %2797 = vsyncadd [#allocation8], 4294955008 }
  0x6c   :  { %2798 = dma.done.wait [#allocation11], 4096  }
  0x6d   :  { %2799 = vsyncadd [#allocation11], 4294963200  ;;  %v2812_v0 = vmov 0   ;;  %v134_v1 = vld [vmem:[%s3044_s1] sm:$0xff]  ;;  %vm156_vm0 = vcmask 1043456   ;;  %vm152_vm1 = vcmask 64512  }
  0x6e   :  { %195 = vmatprep.mubr.bf16.mxu0 %v2812_v0  ;;  %v2053_v2 = vcombine.high %v134_v1, %v134_v1  ;;  %v2052_v3 = vcombine.low %v134_v1, %v134_v1  ;;  %v2340_v4 = vld [vmem:[#allocation2 + $0x4] ss:$8 sps:$4 sm:$0xff]   ;;  %v2342_v5 = vld [vmem:[#allocation2] ss:$8 sps:$4 sm:$0xff]   ;;  %v2343_v6 = vld [vmem:[#allocation2 + $0x14] ss:$8 sps:$4 sm:$0xff]  }
  0x6f   :  { %412 = vmatprep.subr.bf16.mxu1 %v2340_v4  ;;  %v133_v8 = vld [vmem:[%s3043_s0] sm:$0xf]  ;;  %v2346_v10 = vld [vmem:[#allocation2 + $0x24] ss:$8 sps:$4 sm:$0xff]   ;;  %v2348_v11 = vld [vmem:[#allocation2 + $0x20] ss:$8 sps:$4 sm:$0xff]  }
  0x70   :  { %2054 = vmatprep.subr.msk.bf16.mxu0 %vm156_vm0, %v2053_v2  ;;  %v158_v7 = vsel %vm156_vm0, %v2052_v3, 0  ;;  %413 = vmatpush1.bf16.msra.mxu1 %v2342_v5  ;;  %v2345_v9 = vld [vmem:[#allocation2 + $0x10] ss:$8 sps:$4 sm:$0xff]   ;;  %v2349_v12 = vld [vmem:[#allocation2 + $0x34] ss:$8 sps:$4 sm:$0xff]   ;;  %v137_v2 = vlaneseq }
  0x71   :  { %164 = vmatpush1.bf16.msra.mxu0 %v158_v7  ;;  %414 = vmatprep.subr.bf16.mxu1 %v2343_v6  ;;  %v2351_v13 = vld [vmem:[#allocation2 + $0x30] ss:$8 sps:$4 sm:$0xff]   ;;  %v2352_v14 = vld [vmem:[#allocation2 + $0x44] ss:$8 sps:$4 sm:$0xff]   ;;  %v2354_v15 = vld [vmem:[#allocation2 + $0x40] ss:$8 sps:$4 sm:$0xff]  }
  0x72   :  { %v2355_v16 = vld [vmem:[#allocation2 + $0x54] ss:$8 sps:$4 sm:$0xff]   ;;  %v2357_v17 = vld [vmem:[#allocation2 + $0x50] ss:$8 sps:$4 sm:$0xff]   ;;  %v2358_v18 = vld [vmem:[#allocation2 + $0x64] ss:$8 sps:$4 sm:$0xff]  }
  0x73   :  { %v2360_v19 = vld [vmem:[#allocation2 + $0x60] ss:$8 sps:$4 sm:$0xff]   ;;  %v2361_v20 = vld [vmem:[#allocation2 + $0x74] ss:$8 sps:$4 sm:$0xff]   ;;  %v2363_v21 = vld [vmem:[#allocation2 + $0x70] ss:$8 sps:$4 sm:$0xff]  }
  0x74   :  { %2055 = vmatmul.mubr.msk.bf16.vlgmr.msra.gmra.mrb[0].mxu0 %vm152_vm1, %v133_v8  ;;  %415 = vmatpush1.bf16.msra.mxu1 %v2345_v9  ;;  %v2364_v22 = vld [vmem:[#allocation2 + $0x84] ss:$8 sps:$4 sm:$0xff]   ;;  %v2366_v23 = vld [vmem:[#allocation2 + $0x80] ss:$8 sps:$4 sm:$0xff]   ;;  %v2367_v24 = vld [vmem:[#allocation2 + $0x94] ss:$8 sps:$4 sm:$0xff]  }
  0x75   :  { %416 = vmatprep.subr.bf16.mxu1 %v2346_v10  ;;  %v2369_v25 = vld [vmem:[#allocation2 + $0x90] ss:$8 sps:$4 sm:$0xff]   ;;  %v2370_v26 = vld [vmem:[#allocation2 + $0xa4] ss:$8 sps:$4 sm:$0xff]   ;;  %v2372_v27 = vld [vmem:[#allocation2 + $0xa0] ss:$8 sps:$4 sm:$0xff]  }
  0x76   :  { %v2373_v28 = vld [vmem:[#allocation2 + $0xb4] ss:$8 sps:$4 sm:$0xff]   ;;  %v2375_v29 = vld [vmem:[#allocation2 + $0xb0] ss:$8 sps:$4 sm:$0xff]   ;;  %v2376_v30 = vld [vmem:[#allocation2 + $0xc4] ss:$8 sps:$4 sm:$0xff]  }
  0x77   :  { %v2378_v31 = vld [vmem:[#allocation2 + $0xc0] ss:$8 sps:$4 sm:$0xff]   ;;  %v2379_v32 = vld [vmem:[#allocation2 + $0xd4] ss:$8 sps:$4 sm:$0xff]   ;;  %v2381_v33 = vld [vmem:[#allocation2 + $0xd0] ss:$8 sps:$4 sm:$0xff]  }
  0x78   :  { %417 = vmatpush1.bf16.msra.mxu1 %v2348_v11  ;;  %v2382_v34 = vld [vmem:[#allocation2 + $0xe4] ss:$8 sps:$4 sm:$0xff]   ;;  %v2384_v35 = vld [vmem:[#allocation2 + $0xe0] ss:$8 sps:$4 sm:$0xff]   ;;  %v2385_v36 = vld [vmem:[#allocation2 + $0xf4] ss:$8 sps:$4 sm:$0xff]  }
  0x79   :  { %418 = vmatprep.subr.bf16.mxu1 %v2349_v12  ;;  %v2387_v37 = vld [vmem:[#allocation2 + $0xf0] ss:$8 sps:$4 sm:$0xff]   ;;  %v2388_v38 = vld [vmem:[#allocation4] ss:$8 sps:$4 sm:$0xff]   ;;  %v2390_v39 = vld [vmem:[#allocation4 + $0x4] ss:$8 sps:$4 sm:$0xff]  }
  0x7a   :  { %v2393_v40 = vld [vmem:[#allocation4 + $0x14] ss:$8 sps:$4 sm:$0xff]   ;;  %661 = vmatprep.subr.bf16.mxu0 %v2390_v39  ;;  %v2391_v41 = vld [vmem:[#allocation4 + $0x10] ss:$8 sps:$4 sm:$0xff]   ;;  %v2396_v42 = vld [vmem:[#allocation4 + $0x24] ss:$8 sps:$4 sm:$0xff]  }
  0x7b   :  { %662 = vmatpush1.bf16.msra.mxu0 %v2388_v38  ;;  %v2394_v43 = vld [vmem:[#allocation4 + $0x20] ss:$8 sps:$4 sm:$0xff]   ;;  %v2399_v44 = vld [vmem:[#allocation4 + $0x34] ss:$8 sps:$4 sm:$0xff]   ;;  %v2397_v45 = vld [vmem:[#allocation4 + $0x30] ss:$8 sps:$4 sm:$0xff]  }
  0x7c   :  { %419 = vmatpush1.bf16.msra.mxu1 %v2351_v13  ;;  %663 = vmatprep.subr.bf16.mxu0 %v2393_v40  ;;  %v2402_v46 = vld [vmem:[#allocation4 + $0x44] ss:$8 sps:$4 sm:$0xff]   ;;  %v2400_v47 = vld [vmem:[#allocation4 + $0x40] ss:$8 sps:$4 sm:$0xff]   ;;  %v2405_v48 = vld [vmem:[#allocation4 + $0x54] ss:$8 sps:$4 sm:$0xff]  }
  0x7d   :  { %420 = vmatprep.subr.bf16.mxu1 %v2352_v14  ;;  %v2403_v49 = vld [vmem:[#allocation4 + $0x50] ss:$8 sps:$4 sm:$0xff]   ;;  %v2408_v50 = vld [vmem:[#allocation4 + $0x64] ss:$8 sps:$4 sm:$0xff]   ;;  %v2406_v51 = vld [vmem:[#allocation4 + $0x60] ss:$8 sps:$4 sm:$0xff]  }
  0x7e   :  { %v2411_v52 = vld [vmem:[#allocation4 + $0x74] ss:$8 sps:$4 sm:$0xff]   ;;  %v2409_v53 = vld [vmem:[#allocation4 + $0x70] ss:$8 sps:$4 sm:$0xff]   ;;  %v2414_v54 = vld [vmem:[#allocation4 + $0x84] ss:$8 sps:$4 sm:$0xff]  }
  0x7f   :  { %664 = vmatpush1.bf16.msra.mxu0 %v2391_v41  ;;  %v2412_v55 = vld [vmem:[#allocation4 + $0x80] ss:$8 sps:$4 sm:$0xff]   ;;  %v2417_v56 = vld [vmem:[#allocation4 + $0x94] ss:$8 sps:$4 sm:$0xff]   ;;  %v2415_v57 = vld [vmem:[#allocation4 + $0x90] ss:$8 sps:$4 sm:$0xff]  }
  0x80   :  { %421 = vmatpush1.bf16.msra.mxu1 %v2354_v15  ;;  %665 = vmatprep.subr.bf16.mxu0 %v2396_v42  ;;  %v2420_v58 = vld [vmem:[#allocation4 + $0xa4] ss:$8 sps:$4 sm:$0xff]   ;;  %v2418_v59 = vld [vmem:[#allocation4 + $0xa0] ss:$8 sps:$4 sm:$0xff]   ;;  %v2423_v60 = vld [vmem:[#allocation4 + $0xb4] ss:$8 sps:$4 sm:$0xff]  }
  0x81   :  { %422 = vmatprep.subr.bf16.mxu1 %v2355_v16  ;;  %v2421_v61 = vld [vmem:[#allocation4 + $0xb0] ss:$8 sps:$4 sm:$0xff]   ;;  %v2426_v62 = vld [vmem:[#allocation4 + $0xc4] ss:$8 sps:$4 sm:$0xff]   ;;  %v2424_v63 = vld [vmem:[#allocation4 + $0xc0] ss:$8 sps:$4 sm:$0xff]  }
  0x82   :  { %v2429_v0 = vld [vmem:[#allocation4 + $0xd4] ss:$8 sps:$4 sm:$0xff]   ;;  %v2427_v1 = vld [vmem:[#allocation4 + $0xd0] ss:$8 sps:$4 sm:$0xff]   ;;  %v2997_v3 = vshrl.u32 %v137_v2, 7 }
  0x83   :  { %666 = vmatpush1.bf16.msra.mxu0 %v2394_v43  ;;  %v135_v5 = vld [vmem:[%s3045_s2] sm:$0x3]  ;;  %v2462_v39 = vld [vmem:[#allocation6 + $0x84] ss:$8 sps:$4 sm:$0xff]   ;;  %v2460_v40 = vld [vmem:[#allocation6 + $0x80] ss:$8 sps:$4 sm:$0xff]  }
  0x84   :  { %423 = vmatpush1.bf16.msra.mxu1 %v2357_v17  ;;  %667 = vmatprep.subr.bf16.mxu0 %v2399_v44  ;;  %v3000_v4 = vsub.s32 0, %v2997_v3  ;;  %v3006_v6 = vsub.s32 1, %v2997_v3  ;;  %v2457_v38 = vld [vmem:[#allocation6 + $0x70] ss:$8 sps:$4 sm:$0xff]   ;;  %v2465_v41 = vld [vmem:[#allocation6 + $0x94] ss:$8 sps:$4 sm:$0xff]  }
  0x85   :  { %424 = vmatprep.subr.bf16.mxu1 %v2358_v18  ;;  %v2463_v42 = vld [vmem:[#allocation6 + $0x90] ss:$8 sps:$4 sm:$0xff]   ;;  %v2468_v43 = vld [vmem:[#allocation6 + $0xa4] ss:$8 sps:$4 sm:$0xff]   ;;  %v2466_v44 = vld [vmem:[#allocation6 + $0xa0] ss:$8 sps:$4 sm:$0xff]  }
  0x86   :  { %v140_v7 = vrot.slane %v135_v5, %v3000_v4  ;;  %v144_v8 = vrot.slane %v135_v5, %v3006_v6  ;;  %v2483_v2 = vld [vmem:[#allocation6 + $0xf4] ss:$8 sps:$4 sm:$0xff]   ;;  %v2481_v5 = vld [vmem:[#allocation6 + $0xf0] ss:$8 sps:$4 sm:$0xff]  }
  0x87   :  { %668 = vmatpush1.bf16.msra.mxu0 %v2397_v45  ;;  %v2471_v45 = vld [vmem:[#allocation6 + $0xb4] ss:$8 sps:$4 sm:$0xff]  }
  0x88   :  { %425 = vmatpush1.bf16.msra.mxu1 %v2360_v19  ;;  %669 = vmatprep.subr.bf16.mxu0 %v2402_v46  ;;  %v2432_v19 = vld [vmem:[#allocation4 + $0xe4] ss:$8 sps:$4 sm:$0xff]   ;;  %v2469_v46 = vld [vmem:[#allocation6 + $0xb0] ss:$8 sps:$4 sm:$0xff]  }
  0x89   :  { %426 = vmatprep.subr.bf16.mxu1 %v2361_v20  ;;  %v2430_v20 = vld [vmem:[#allocation4 + $0xe0] ss:$8 sps:$4 sm:$0xff]  }
  0x8b   :  { %670 = vmatpush1.bf16.msra.mxu0 %v2400_v47  ;;  %v2474_v47 = vld [vmem:[#allocation6 + $0xc4] ss:$8 sps:$4 sm:$0xff]  }
  0x8c   :  { %427 = vmatpush1.bf16.msra.mxu1 %v2363_v21  ;;  %671 = vmatprep.subr.bf16.mxu0 %v2405_v48  ;;  %v2435_v21 = vld [vmem:[#allocation4 + $0xf4] ss:$8 sps:$4 sm:$0xff]   ;;  %v2472_v48 = vld [vmem:[#allocation6 + $0xc0] ss:$8 sps:$4 sm:$0xff]  }
  0x8d   :  { %428 = vmatprep.subr.bf16.mxu1 %v2364_v22  ;;  %v2433_v22 = vld [vmem:[#allocation4 + $0xf0] ss:$8 sps:$4 sm:$0xff]  }
  0x8f   :  { %672 = vmatpush1.bf16.msra.mxu0 %v2403_v49  ;;  %v2477_v49 = vld [vmem:[#allocation6 + $0xd4] ss:$8 sps:$4 sm:$0xff]  }
  0x90   :  { %429 = vmatpush1.bf16.msra.mxu1 %v2366_v23  ;;  %673 = vmatprep.subr.bf16.mxu0 %v2408_v50  ;;  %v2436_v23 = vld [vmem:[#allocation6] ss:$8 sps:$4 sm:$0xff]   ;;  %v2475_v50 = vld [vmem:[#allocation6 + $0xd0] ss:$8 sps:$4 sm:$0xff]  }
  0x91   :  { %430 = vmatprep.subr.bf16.mxu1 %v2367_v24  ;;  %v2438_v24 = vld [vmem:[#allocation6 + $0x4] ss:$8 sps:$4 sm:$0xff]  }
  0x93   :  { %674 = vmatpush1.bf16.msra.mxu0 %v2406_v51  ;;  %v240_v51 = vld [vmem:[%s3047_s4] sm:$0x3] }
  0x94   :  { %431 = vmatpush1.bf16.msra.mxu1 %v2369_v25  ;;  %675 = vmatprep.subr.bf16.mxu0 %v2411_v52  ;;  %v2441_v25 = vld [vmem:[#allocation6 + $0x14] ss:$8 sps:$4 sm:$0xff]   ;;  %v245_v52 = vrot.slane %v240_v51, %v3000_v4 }
  0x95   :  { %432 = vmatprep.subr.bf16.mxu1 %v2370_v26  ;;  %v2439_v26 = vld [vmem:[#allocation6 + $0x10] ss:$8 sps:$4 sm:$0xff]  }
  0x97   :  { %676 = vmatpush1.bf16.msra.mxu0 %v2409_v53  ;;  %v249_v53 = vrot.slane %v240_v51, %v3006_v6  ;;  %v2529_v51 = vld [vmem:[#allocation7 + $0xf0] ss:$8 sps:$4 sm:$0xff]  }
  0x98   :  { %433 = vmatpush1.bf16.msra.mxu1 %v2372_v27  ;;  %677 = vmatprep.subr.bf16.mxu0 %v2414_v54  ;;  %v2444_v27 = vld [vmem:[#allocation6 + $0x24] ss:$8 sps:$4 sm:$0xff]  }
  0x99   :  { %434 = vmatprep.subr.bf16.mxu1 %v2373_v28  ;;  %v2442_v28 = vld [vmem:[#allocation6 + $0x20] ss:$8 sps:$4 sm:$0xff]  }
  0x9b   :  { %678 = vmatpush1.bf16.msra.mxu0 %v2412_v55 }
  0x9c   :  { %435 = vmatpush1.bf16.msra.mxu1 %v2375_v29  ;;  %679 = vmatprep.subr.bf16.mxu0 %v2417_v56  ;;  %v2447_v29 = vld [vmem:[#allocation6 + $0x34] ss:$8 sps:$4 sm:$0xff]  }
  0x9d   :  { %436 = vmatprep.subr.bf16.mxu1 %v2376_v30  ;;  %v2445_v30 = vld [vmem:[#allocation6 + $0x30] ss:$8 sps:$4 sm:$0xff]  }
  0x9f   :  { %680 = vmatpush1.bf16.msra.mxu0 %v2415_v57 }
  0xa0   :  { %437 = vmatpush1.bf16.msra.mxu1 %v2378_v31  ;;  %681 = vmatprep.subr.bf16.mxu0 %v2420_v58  ;;  %v2450_v31 = vld [vmem:[#allocation6 + $0x44] ss:$8 sps:$4 sm:$0xff]  }
  0xa1   :  { %438 = vmatprep.subr.bf16.mxu1 %v2379_v32  ;;  %v2448_v32 = vld [vmem:[#allocation6 + $0x40] ss:$8 sps:$4 sm:$0xff]  }
  0xa3   :  { %682 = vmatpush1.bf16.msra.mxu0 %v2418_v59 }
  0xa4   :  { %439 = vmatpush1.bf16.msra.mxu1 %v2381_v33  ;;  %683 = vmatprep.subr.bf16.mxu0 %v2423_v60  ;;  %v2453_v33 = vld [vmem:[#allocation6 + $0x54] ss:$8 sps:$4 sm:$0xff]  }
  0xa5   :  { %440 = vmatprep.subr.bf16.mxu1 %v2382_v34  ;;  %v2451_v34 = vld [vmem:[#allocation6 + $0x50] ss:$8 sps:$4 sm:$0xff]  }
  0xa7   :  { %684 = vmatpush1.bf16.msra.mxu0 %v2421_v61 }
  0xa8   :  { %441 = vmatpush1.bf16.msra.mxu1 %v2384_v35  ;;  %685 = vmatprep.subr.bf16.mxu0 %v2426_v62  ;;  %v2456_v35 = vld [vmem:[#allocation6 + $0x64] ss:$8 sps:$4 sm:$0xff]  }
  0xa9   :  { %442 = vmatprep.subr.bf16.mxu1 %v2385_v36  ;;  %v2454_v36 = vld [vmem:[#allocation6 + $0x60] ss:$8 sps:$4 sm:$0xff]  }
  0xab   :  { %686 = vmatpush1.bf16.msra.mxu0 %v2424_v63 }
  0xac   :  { %443 = vmatpush1.bf16.msra.mxu1 %v2387_v37  ;;  %687 = vmatprep.subr.bf16.mxu0 %v2429_v0  ;;  %v2459_v37 = vld [vmem:[#allocation6 + $0x74] ss:$8 sps:$4 sm:$0xff]   ;;  %v2480_v0 = vld [vmem:[#allocation6 + $0xe4] ss:$8 sps:$4 sm:$0xff]  }
  0xad   :  { %910 = vmatprep.subr.bf16.mxu1 %v2438_v24  ;;  %v2508_v24 = vld [vmem:[#allocation7 + $0x80] ss:$8 sps:$4 sm:$0xff]  }
  0xaf   :  { %688 = vmatpush1.bf16.msra.mxu0 %v2427_v1  ;;  %v2478_v1 = vld [vmem:[#allocation6 + $0xe0] ss:$8 sps:$4 sm:$0xff]  }
  0xb0   :  { %689 = vmatprep.subr.bf16.mxu0 %v2432_v19  ;;  %v2504_v19 = vld [vmem:[#allocation7 + $0x64] ss:$8 sps:$4 sm:$0xff]  }
  0xb3   :  { %690 = vmatpush1.bf16.msra.mxu0 %v2430_v20  ;;  %v2502_v20 = vld [vmem:[#allocation7 + $0x60] ss:$8 sps:$4 sm:$0xff]  }
  0xb4   :  { %691 = vmatprep.subr.bf16.mxu0 %v2435_v21  ;;  %v2507_v21 = vld [vmem:[#allocation7 + $0x74] ss:$8 sps:$4 sm:$0xff]  }
  0xb7   :  { %692 = vmatpush1.bf16.msra.mxu0 %v2433_v22  ;;  %v2505_v22 = vld [vmem:[#allocation7 + $0x70] ss:$8 sps:$4 sm:$0xff]  }
 0x147   :  { %v197_v9 = vpop.f32.mrb[0].mxu0 }
 0x148   :  { %v198_v10 = vadd.f32 %v197_v9, %v140_v7  ;;  %v199_v11 = vpop.f32.mrb[1].mxu0  ;;  %v2484_v7 = vld [vmem:[#allocation7] ss:$8 sps:$4 sm:$0xff]   ;;  %v2489_v9 = vld [vmem:[#allocation7 + $0x14] ss:$8 sps:$4 sm:$0xff]  }
 0x149   :  { %v200_v12 = vadd.f32 %v199_v11, %v144_v8  ;;  %v201_v13 = vpop.f32.mrb[2].mxu0  ;;  %v2486_v8 = vld [vmem:[#allocation7 + $0x4] ss:$8 sps:$4 sm:$0xff]  }
 0x14a   :  { %v204_v14 = vmax.f32 %v198_v10, 0.0  ;;  %v202_v15 = vpop.f32.mrb[3].mxu0  ;;  %1159 = vmatprep.subr.bf16.mxu0 %v2486_v8  ;;  %v2487_v10 = vld [vmem:[#allocation7 + $0x10] ss:$8 sps:$4 sm:$0xff]   ;;  %v2492_v11 = vld [vmem:[#allocation7 + $0x24] ss:$8 sps:$4 sm:$0xff]  }
 0x14b   :  { %v205_v16 = vmax.f32 %v200_v12, 0.0  ;;  %v2490_v12 = vld [vmem:[#allocation7 + $0x20] ss:$8 sps:$4 sm:$0xff]   ;;  %v2495_v13 = vld [vmem:[#allocation7 + $0x34] ss:$8 sps:$4 sm:$0xff]  }
 0x14c   :  { %v206_v18 = vpack.c.bf16 %v204_v14, %v204_v14  ;;  %v2493_v14 = vld [vmem:[#allocation7 + $0x30] ss:$8 sps:$4 sm:$0xff]   ;;  %v2498_v15 = vld [vmem:[#allocation7 + $0x44] ss:$8 sps:$4 sm:$0xff]  }
 0x14d   :  { %v207_v17 = vpack.c.bf16 %v205_v16, %v205_v16  ;;  %v2496_v16 = vld [vmem:[#allocation7 + $0x40] ss:$8 sps:$4 sm:$0xff]   ;;  %v2582_v8 = vld [vmem:[#allocation9 + $0x104] ss:$16 sps:$4 sm:$0xff]  }
 0x14f   :  { %444 = vmatprep.mubr.bf16.mxu1 %v207_v17  ;;  %v2501_v17 = vld [vmem:[#allocation7 + $0x54] ss:$8 sps:$4 sm:$0xff]  }
 0x150   :  { %445 = vmatmul.mubr.bf16.vlgmr.msra.gmra.mrb[0].mxu1 %v206_v18  ;;  %v2499_v18 = vld [vmem:[#allocation7 + $0x50] ss:$8 sps:$4 sm:$0xff]  }
 0x151   :  { %911 = vmatpush1.bf16.msra.mxu1 %v2436_v23  ;;  %v2510_v23 = vld [vmem:[#allocation7 + $0x84] ss:$8 sps:$4 sm:$0xff]  }
 0x152   :  { %912 = vmatprep.subr.bf16.mxu1 %v2441_v25  ;;  %v2513_v25 = vld [vmem:[#allocation7 + $0x94] ss:$8 sps:$4 sm:$0xff]  }
 0x155   :  { %913 = vmatpush1.bf16.msra.mxu1 %v2439_v26  ;;  %v2511_v26 = vld [vmem:[#allocation7 + $0x90] ss:$8 sps:$4 sm:$0xff]  }
 0x156   :  { %914 = vmatprep.subr.bf16.mxu1 %v2444_v27  ;;  %v2516_v27 = vld [vmem:[#allocation7 + $0xa4] ss:$8 sps:$4 sm:$0xff]  }
 0x159   :  { %915 = vmatpush1.bf16.msra.mxu1 %v2442_v28  ;;  %v2514_v28 = vld [vmem:[#allocation7 + $0xa0] ss:$8 sps:$4 sm:$0xff]  }
 0x15a   :  { %916 = vmatprep.subr.bf16.mxu1 %v2447_v29  ;;  %v2519_v29 = vld [vmem:[#allocation7 + $0xb4] ss:$8 sps:$4 sm:$0xff]  }
 0x15d   :  { %917 = vmatpush1.bf16.msra.mxu1 %v2445_v30  ;;  %v2517_v30 = vld [vmem:[#allocation7 + $0xb0] ss:$8 sps:$4 sm:$0xff]  }
 0x15e   :  { %918 = vmatprep.subr.bf16.mxu1 %v2450_v31  ;;  %v2522_v31 = vld [vmem:[#allocation7 + $0xc4] ss:$8 sps:$4 sm:$0xff]  }
 0x161   :  { %919 = vmatpush1.bf16.msra.mxu1 %v2448_v32  ;;  %v2520_v32 = vld [vmem:[#allocation7 + $0xc0] ss:$8 sps:$4 sm:$0xff]  }
 0x162   :  { %920 = vmatprep.subr.bf16.mxu1 %v2453_v33  ;;  %v2525_v33 = vld [vmem:[#allocation7 + $0xd4] ss:$8 sps:$4 sm:$0xff]  }
 0x165   :  { %921 = vmatpush1.bf16.msra.mxu1 %v2451_v34  ;;  %v2523_v34 = vld [vmem:[#allocation7 + $0xd0] ss:$8 sps:$4 sm:$0xff]  }
 0x166   :  { %922 = vmatprep.subr.bf16.mxu1 %v2456_v35  ;;  %v489_v35 = vld [vmem:[%s3049_s6] sm:$0x3] }
 0x169   :  { %923 = vmatpush1.bf16.msra.mxu1 %v2454_v36  ;;  %v494_v36 = vrot.slane %v489_v35, %v3000_v4 }
 0x16a   :  { %924 = vmatprep.subr.bf16.mxu1 %v2459_v37  ;;  %v498_v37 = vrot.slane %v489_v35, %v3006_v6  ;;  %v2541_v35 = vld [vmem:[#allocation9 + $0x28] ss:$16 sps:$4 sm:$0xff]  }
 0x16d   :  { %925 = vmatpush1.bf16.msra.mxu1 %v2457_v38 }
 0x16e   :  { %926 = vmatprep.subr.bf16.mxu1 %v2462_v39 }
 0x171   :  { %927 = vmatpush1.bf16.msra.mxu1 %v2460_v40 }
 0x172   :  { %928 = vmatprep.subr.bf16.mxu1 %v2465_v41 }
 0x175   :  { %929 = vmatpush1.bf16.msra.mxu1 %v2463_v42 }
 0x176   :  { %930 = vmatprep.subr.bf16.mxu1 %v2468_v43 }
 0x179   :  { %931 = vmatpush1.bf16.msra.mxu1 %v2466_v44 }
 0x17a   :  { %932 = vmatprep.subr.bf16.mxu1 %v2471_v45 }
 0x17d   :  { %933 = vmatpush1.bf16.msra.mxu1 %v2469_v46 }
 0x17e   :  { %934 = vmatprep.subr.bf16.mxu1 %v2474_v47 }
 0x181   :  { %935 = vmatpush1.bf16.msra.mxu1 %v2472_v48  ;;  %v2528_v48 = vld [vmem:[#allocation7 + $0xe4] ss:$8 sps:$4 sm:$0xff]  }
 0x182   :  { %936 = vmatprep.subr.bf16.mxu1 %v2477_v49  ;;  %v2526_v49 = vld [vmem:[#allocation7 + $0xe0] ss:$8 sps:$4 sm:$0xff]  }
 0x185   :  { %937 = vmatpush1.bf16.msra.mxu1 %v2475_v50  ;;  %v2531_v50 = vld [vmem:[#allocation7 + $0xf4] ss:$8 sps:$4 sm:$0xff]  }
 0x186   :  { %938 = vmatprep.subr.bf16.mxu1 %v2480_v0  ;;  %v2562_v0 = vld [vmem:[#allocation9 + $0xa0] ss:$16 sps:$4 sm:$0xff]  }
 0x189   :  { %939 = vmatpush1.bf16.msra.mxu1 %v2478_v1  ;;  %v2570_v1 = vld [vmem:[#allocation9 + $0xc4] ss:$16 sps:$4 sm:$0xff]  }
 0x18a   :  { %940 = vmatprep.subr.bf16.mxu1 %v2483_v2  ;;  %v2568_v2 = vld [vmem:[#allocation9 + $0xc0] ss:$16 sps:$4 sm:$0xff]  }
 0x18d   :  { %941 = vmatpush1.bf16.msra.mxu1 %v2481_v5  ;;  %v2576_v5 = vld [vmem:[#allocation9 + $0xe4] ss:$16 sps:$4 sm:$0xff]  }
 0x223   :  { %v446_v54 = vpop.f32.mrb[0].mxu1 }
 0x224   :  { %v447_v55 = vadd.f32 %v446_v54, %v245_v52  ;;  %v448_v56 = vpop.f32.mrb[1].mxu1  ;;  %v2532_v52 = vld [vmem:[#allocation9] ss:$16 sps:$4 sm:$0xff]   ;;  %v2537_v54 = vld [vmem:[#allocation9 + $0xc] ss:$16 sps:$4 sm:$0xff]  }
 0x225   :  { %v449_v57 = vadd.f32 %v448_v56, %v249_v53  ;;  %v450_v58 = vpop.f32.mrb[2].mxu1  ;;  %v2534_v53 = vld [vmem:[#allocation9 + $0x4] ss:$16 sps:$4 sm:$0xff]   ;;  %v2538_v56 = vld [vmem:[#allocation9 + $0x20] ss:$16 sps:$4 sm:$0xff]  }
 0x226   :  { %v453_v59 = vmax.f32 %v447_v55, 0.0  ;;  %v451_v60 = vpop.f32.mrb[3].mxu1  ;;  %v2540_v55 = vld [vmem:[#allocation9 + $0x24] ss:$16 sps:$4 sm:$0xff]   ;;  %1610 = vmatprep.subr.bf16.mxu1 %v2534_v53  ;;  %v2544_v58 = vld [vmem:[#allocation9 + $0x40] ss:$16 sps:$4 sm:$0xff]  }
 0x227   :  { %v454_v61 = vmax.f32 %v449_v57, 0.0  ;;  %v2546_v57 = vld [vmem:[#allocation9 + $0x44] ss:$16 sps:$4 sm:$0xff]   ;;  %v2550_v60 = vld [vmem:[#allocation9 + $0x60] ss:$16 sps:$4 sm:$0xff]  }
 0x228   :  { %v455_v63 = vpack.c.bf16 %v453_v59, %v453_v59  ;;  %v2552_v59 = vld [vmem:[#allocation9 + $0x64] ss:$16 sps:$4 sm:$0xff]   ;;  %v2595_v53 = vld [vmem:[#allocation9 + $0x148] ss:$16 sps:$4 sm:$0xff]  }
 0x229   :  { %v456_v62 = vpack.c.bf16 %v454_v61, %v454_v61  ;;  %v2558_v61 = vld [vmem:[#allocation9 + $0x84] ss:$16 sps:$4 sm:$0xff]  }
 0x22b   :  { %693 = vmatprep.mubr.bf16.mxu0 %v456_v62  ;;  %v2556_v62 = vld [vmem:[#allocation9 + $0x80] ss:$16 sps:$4 sm:$0xff]  }
 0x22c   :  { %694 = vmatmul.mubr.bf16.vlgmr.msra.gmra.mrb[4].mxu0 %v455_v63  ;;  %v2564_v63 = vld [vmem:[#allocation9 + $0xa4] ss:$16 sps:$4 sm:$0xff]  }
 0x22d   :  { %1160 = vmatpush1.bf16.msra.mxu0 %v2484_v7  ;;  %v2574_v7 = vld [vmem:[#allocation9 + $0xe0] ss:$16 sps:$4 sm:$0xff]  }
 0x22e   :  { %1161 = vmatprep.subr.bf16.mxu0 %v2489_v9  ;;  %v2580_v9 = vld [vmem:[#allocation9 + $0x100] ss:$16 sps:$4 sm:$0xff]  }
 0x231   :  { %1162 = vmatpush1.bf16.msra.mxu0 %v2487_v10  ;;  %v2588_v10 = vld [vmem:[#allocation9 + $0x124] ss:$16 sps:$4 sm:$0xff]  }
 0x232   :  { %1163 = vmatprep.subr.bf16.mxu0 %v2492_v11  ;;  %v2586_v11 = vld [vmem:[#allocation9 + $0x120] ss:$16 sps:$4 sm:$0xff]  }
 0x235   :  { %1164 = vmatpush1.bf16.msra.mxu0 %v2490_v12  ;;  %v2594_v12 = vld [vmem:[#allocation9 + $0x144] ss:$16 sps:$4 sm:$0xff]  }
 0x236   :  { %1165 = vmatprep.subr.bf16.mxu0 %v2495_v13  ;;  %v2592_v13 = vld [vmem:[#allocation9 + $0x140] ss:$16 sps:$4 sm:$0xff]  }
 0x239   :  { %1166 = vmatpush1.bf16.msra.mxu0 %v2493_v14  ;;  %v2600_v14 = vld [vmem:[#allocation9 + $0x164] ss:$16 sps:$4 sm:$0xff]  }
 0x23a   :  { %1167 = vmatprep.subr.bf16.mxu0 %v2498_v15  ;;  %v2598_v15 = vld [vmem:[#allocation9 + $0x160] ss:$16 sps:$4 sm:$0xff]  }
 0x23d   :  { %1168 = vmatpush1.bf16.msra.mxu0 %v2496_v16  ;;  %v2606_v16 = vld [vmem:[#allocation9 + $0x184] ss:$16 sps:$4 sm:$0xff]  }
 0x23e   :  { %1169 = vmatprep.subr.bf16.mxu0 %v2501_v17  ;;  %v2604_v17 = vld [vmem:[#allocation9 + $0x180] ss:$16 sps:$4 sm:$0xff]  }
 0x241   :  { %1170 = vmatpush1.bf16.msra.mxu0 %v2499_v18  ;;  %v2612_v18 = vld [vmem:[#allocation9 + $0x1a4] ss:$16 sps:$4 sm:$0xff]  }
 0x242   :  { %1171 = vmatprep.subr.bf16.mxu0 %v2504_v19  ;;  %v2610_v19 = vld [vmem:[#allocation9 + $0x1a0] ss:$16 sps:$4 sm:$0xff]  }
 0x245   :  { %1172 = vmatpush1.bf16.msra.mxu0 %v2502_v20  ;;  %v738_v20 = vld [vmem:[%s3051_s8] sm:$0x3] }
 0x246   :  { %1173 = vmatprep.subr.bf16.mxu0 %v2507_v21  ;;  %v743_v21 = vrot.slane %v738_v20, %v3000_v4 }
 0x249   :  { %1174 = vmatpush1.bf16.msra.mxu0 %v2505_v22  ;;  %v747_v22 = vrot.slane %v738_v20, %v3006_v6 }
 0x24a   :  { %1175 = vmatprep.subr.bf16.mxu0 %v2510_v23 }
 0x24d   :  { %1176 = vmatpush1.bf16.msra.mxu0 %v2508_v24 }
 0x24e   :  { %1177 = vmatprep.subr.bf16.mxu0 %v2513_v25 }
 0x251   :  { %1178 = vmatpush1.bf16.msra.mxu0 %v2511_v26 }
 0x252   :  { %1179 = vmatprep.subr.bf16.mxu0 %v2516_v27 }
 0x255   :  { %1180 = vmatpush1.bf16.msra.mxu0 %v2514_v28 }
 0x256   :  { %1181 = vmatprep.subr.bf16.mxu0 %v2519_v29 }
 0x259   :  { %1182 = vmatpush1.bf16.msra.mxu0 %v2517_v30 }
 0x25a   :  { %1183 = vmatprep.subr.bf16.mxu0 %v2522_v31 }
 0x25d   :  { %1184 = vmatpush1.bf16.msra.mxu0 %v2520_v32  ;;  %v2535_v32 = vld [vmem:[#allocation9 + $0x8] ss:$16 sps:$4 sm:$0xff]  }
 0x25e   :  { %1185 = vmatprep.subr.bf16.mxu0 %v2525_v33 }
 0x261   :  { %1186 = vmatpush1.bf16.msra.mxu0 %v2523_v34  ;;  %v2543_v34 = vld [vmem:[#allocation9 + $0x2c] ss:$16 sps:$4 sm:$0xff]  }
 0x262   :  { %1187 = vmatprep.subr.bf16.mxu0 %v2528_v48  ;;  %v2585_v48 = vld [vmem:[#allocation9 + $0x10c] ss:$16 sps:$4 sm:$0xff]  }
 0x265   :  { %1188 = vmatpush1.bf16.msra.mxu0 %v2526_v49  ;;  %v2583_v49 = vld [vmem:[#allocation9 + $0x108] ss:$16 sps:$4 sm:$0xff]  }
 0x266   :  { %1189 = vmatprep.subr.bf16.mxu0 %v2531_v50  ;;  %v2591_v50 = vld [vmem:[#allocation9 + $0x12c] ss:$16 sps:$4 sm:$0xff]  }
 0x269   :  { %1190 = vmatpush1.bf16.msra.mxu0 %v2529_v51  ;;  %v2589_v51 = vld [vmem:[#allocation9 + $0x128] ss:$16 sps:$4 sm:$0xff]  }
 0x26a   :  { %1651 = vmatprep.subr.bf16.mxu0 %v2537_v54  ;;  %v2603_v54 = vld [vmem:[#allocation9 + $0x16c] ss:$16 sps:$4 sm:$0xff]  }
 0x2ff   :  { %v695_v38 = vpop.f32.mrb[4].mxu0 }
 0x300   :  { %v696_v39 = vadd.f32 %v695_v38, %v494_v36  ;;  %v697_v40 = vpop.f32.mrb[5].mxu0  ;;  %v2549_v36 = vld [vmem:[#allocation9 + $0x4c] ss:$16 sps:$4 sm:$0xff]  }
 0x301   :  { %v698_v41 = vadd.f32 %v697_v40, %v498_v37  ;;  %v699_v42 = vpop.f32.mrb[6].mxu0  ;;  %v2547_v37 = vld [vmem:[#allocation9 + $0x48] ss:$16 sps:$4 sm:$0xff]   ;;  %v2555_v38 = vld [vmem:[#allocation9 + $0x6c] ss:$16 sps:$4 sm:$0xff]  }
 0x302   :  { %v702_v43 = vmax.f32 %v696_v39, 0.0  ;;  %v700_v44 = vpop.f32.mrb[7].mxu0  ;;  %v2553_v39 = vld [vmem:[#allocation9 + $0x68] ss:$16 sps:$4 sm:$0xff]   ;;  %v2561_v40 = vld [vmem:[#allocation9 + $0x8c] ss:$16 sps:$4 sm:$0xff]  }
 0x303   :  { %v703_v45 = vmax.f32 %v698_v41, 0.0  ;;  %v2559_v41 = vld [vmem:[#allocation9 + $0x88] ss:$16 sps:$4 sm:$0xff]   ;;  %v2567_v42 = vld [vmem:[#allocation9 + $0xac] ss:$16 sps:$4 sm:$0xff]  }
 0x304   :  { %v704_v47 = vpack.c.bf16 %v702_v43, %v702_v43  ;;  %v2565_v43 = vld [vmem:[#allocation9 + $0xa8] ss:$16 sps:$4 sm:$0xff]   ;;  %v2573_v44 = vld [vmem:[#allocation9 + $0xcc] ss:$16 sps:$4 sm:$0xff]  }
 0x305   :  { %v705_v46 = vpack.c.bf16 %v703_v45, %v703_v45  ;;  %v2571_v45 = vld [vmem:[#allocation9 + $0xc8] ss:$16 sps:$4 sm:$0xff]  }
 0x307   :  { %942 = vmatprep.mubr.bf16.mxu1 %v705_v46  ;;  %v2579_v46 = vld [vmem:[#allocation9 + $0xec] ss:$16 sps:$4 sm:$0xff]  }
 0x308   :  { %943 = vmatmul.mubr.bf16.vlgmr.msra.gmra.mrb[4].mxu1 %v704_v47  ;;  %v2577_v47 = vld [vmem:[#allocation9 + $0xe8] ss:$16 sps:$4 sm:$0xff]  }
 0x309   :  { %1611 = vmatpush1.bf16.msra.mxu1 %v2532_v52  ;;  %v2597_v52 = vld [vmem:[#allocation9 + $0x14c] ss:$16 sps:$4 sm:$0xff]  }
 0x30a   :  { %1612 = vmatprep.subr.bf16.mxu1 %v2540_v55  ;;  %v2601_v55 = vld [vmem:[#allocation9 + $0x168] ss:$16 sps:$4 sm:$0xff]  }
 0x30d   :  { %1613 = vmatpush1.bf16.msra.mxu1 %v2538_v56  ;;  %v2609_v56 = vld [vmem:[#allocation9 + $0x18c] ss:$16 sps:$4 sm:$0xff]  }
 0x30e   :  { %1614 = vmatprep.subr.bf16.mxu1 %v2546_v57  ;;  %v2607_v57 = vld [vmem:[#allocation9 + $0x188] ss:$16 sps:$4 sm:$0xff]  }
 0x311   :  { %1615 = vmatpush1.bf16.msra.mxu1 %v2544_v58  ;;  %v2615_v58 = vld [vmem:[#allocation9 + $0x1ac] ss:$16 sps:$4 sm:$0xff]  }
 0x312   :  { %1616 = vmatprep.subr.bf16.mxu1 %v2552_v59  ;;  %v2613_v59 = vld [vmem:[#allocation9 + $0x1a8] ss:$16 sps:$4 sm:$0xff]  }
 0x315   :  { %1617 = vmatpush1.bf16.msra.mxu1 %v2550_v60  ;;  %v2618_v60 = vld [vmem:[#allocation9 + $0x1c4] ss:$16 sps:$4 sm:$0xff]  }
 0x316   :  { %1618 = vmatprep.subr.bf16.mxu1 %v2558_v61  ;;  %v2621_v61 = vld [vmem:[#allocation9 + $0x1cc] ss:$16 sps:$4 sm:$0xff]  }
 0x319   :  { %1619 = vmatpush1.bf16.msra.mxu1 %v2556_v62  ;;  %v2616_v62 = vld [vmem:[#allocation9 + $0x1c0] ss:$16 sps:$4 sm:$0xff]  }
 0x31a   :  { %1620 = vmatprep.subr.bf16.mxu1 %v2564_v63  ;;  %v2619_v63 = vld [vmem:[#allocation9 + $0x1c8] ss:$16 sps:$4 sm:$0xff]  }
 0x31d   :  { %1621 = vmatpush1.bf16.msra.mxu1 %v2562_v0  ;;  %v2624_v0 = vld [vmem:[#allocation9 + $0x1e4] ss:$16 sps:$4 sm:$0xff]  }
 0x31e   :  { %1622 = vmatprep.subr.bf16.mxu1 %v2570_v1  ;;  %v2627_v1 = vld [vmem:[#allocation9 + $0x1ec] ss:$16 sps:$4 sm:$0xff]  }
 0x321   :  { %1623 = vmatpush1.bf16.msra.mxu1 %v2568_v2  ;;  %v2622_v2 = vld [vmem:[#allocation9 + $0x1e0] ss:$16 sps:$4 sm:$0xff]  }
 0x322   :  { %1624 = vmatprep.subr.bf16.mxu1 %v2576_v5  ;;  %v2625_v5 = vld [vmem:[#allocation9 + $0x1e8] ss:$16 sps:$4 sm:$0xff]  }
 0x325   :  { %1625 = vmatpush1.bf16.msra.mxu1 %v2574_v7  ;;  %v2628_v7 = vld [vmem:[#allocation10 + $0x40] sm:$0xff]  }
 0x326   :  { %1626 = vmatprep.subr.bf16.mxu1 %v2582_v8  ;;  %v2629_v8 = vld [vmem:[#allocation10 + $0xc0] sm:$0xff]  }
 0x329   :  { %1627 = vmatpush1.bf16.msra.mxu1 %v2580_v9  ;;  %v987_v9 = vld [vmem:[%s3053_s10] sm:$0x3] }
 0x32a   :  { %1628 = vmatprep.subr.bf16.mxu1 %v2588_v10  ;;  %v992_v10 = vrot.slane %v987_v9, %v3000_v4 }
 0x32d   :  { %1629 = vmatpush1.bf16.msra.mxu1 %v2586_v11  ;;  %v996_v11 = vrot.slane %v987_v9, %v3006_v6 }
 0x32e   :  { %1630 = vmatprep.subr.bf16.mxu1 %v2594_v12 }
 0x331   :  { %1631 = vmatpush1.bf16.msra.mxu1 %v2592_v13 }
 0x332   :  { %1632 = vmatprep.subr.bf16.mxu1 %v2600_v14 }
 0x335   :  { %1633 = vmatpush1.bf16.msra.mxu1 %v2598_v15 }
 0x336   :  { %1634 = vmatprep.subr.bf16.mxu1 %v2606_v16 }
 0x339   :  { %1635 = vmatpush1.bf16.msra.mxu1 %v2604_v17 }
 0x33a   :  { %1636 = vmatprep.subr.bf16.mxu1 %v2612_v18 }
 0x33d   :  { %1637 = vmatpush1.bf16.msra.mxu1 %v2610_v19 }
 0x33e   :  { %1638 = vmatprep.subr.bf16.mxu1 %v2618_v60 }
 0x341   :  { %1639 = vmatpush1.bf16.msra.mxu1 %v2616_v62 }
 0x342   :  { %1640 = vmatprep.subr.bf16.mxu1 %v2624_v0 }
 0x345   :  { %1641 = vmatpush1.bf16.msra.mxu1 %v2622_v2 }
 0x346   :  { %2281 = vmatprep.subr.bf16.mxu1 %v2628_v7 }
 0x3db   :  { %v944_v23 = vpop.f32.mrb[4].mxu1 }
 0x3dc   :  { %v945_v24 = vadd.f32 %v944_v23, %v743_v21  ;;  %v946_v25 = vpop.f32.mrb[5].mxu1  ;;  %v2630_v21 = vld [vmem:[#allocation10] sm:$0xff]  }
 0x3dd   :  { %v947_v26 = vadd.f32 %v946_v25, %v747_v22  ;;  %v948_v27 = vpop.f32.mrb[6].mxu1  ;;  %v2631_v22 = vld [vmem:[#allocation10 + $0x80] sm:$0xff]   ;;  %v2633_v25 = vld [vmem:[#allocation10 + $0xc8] sm:$0xff]  }
 0x3de   :  { %v951_v28 = vmax.f32 %v945_v24, 0.0  ;;  %v949_v29 = vpop.f32.mrb[7].mxu1  ;;  %v2632_v24 = vld [vmem:[#allocation10 + $0x48] sm:$0xff]  }
 0x3df   :  { %v952_v30 = vmax.f32 %v947_v26, 0.0  ;;  %v2634_v26 = vld [vmem:[#allocation10 + $0x8] sm:$0xff]   ;;  %v2637_v29 = vld [vmem:[#allocation10 + $0xd0] sm:$0xff]  }
 0x3e0   :  { %v953_v33 = vpack.c.bf16 %v951_v28, %v951_v28  ;;  %v2635_v27 = vld [vmem:[#allocation10 + $0x88] sm:$0xff]   ;;  %v2636_v28 = vld [vmem:[#allocation10 + $0x50] sm:$0xff]  }
 0x3e1   :  { %v954_v31 = vpack.c.bf16 %v952_v30, %v952_v30  ;;  %v2638_v30 = vld [vmem:[#allocation10 + $0x10] sm:$0xff]  }
 0x3e3   :  { %1191 = vmatprep.mubr.bf16.mxu0 %v954_v31  ;;  %v2639_v31 = vld [vmem:[#allocation10 + $0x90] sm:$0xff]  }
 0x3e4   :  { %1192 = vmatmul.mubr.bf16.vlgmr.msra.gmra.mrb[8].mxu0 %v953_v33  ;;  %v2641_v33 = vld [vmem:[#allocation10 + $0xd8] sm:$0xff]  }
 0x3e5   :  { %1652 = vmatpush1.bf16.msra.mxu0 %v2535_v32  ;;  %v2640_v32 = vld [vmem:[#allocation10 + $0x58] sm:$0xff]  }
 0x3e6   :  { %1653 = vmatprep.subr.bf16.mxu0 %v2543_v34  ;;  %v2642_v34 = vld [vmem:[#allocation10 + $0x18] sm:$0xff]  }
 0x3e9   :  { %1654 = vmatpush1.bf16.msra.mxu0 %v2541_v35  ;;  %v2643_v35 = vld [vmem:[#allocation10 + $0x98] sm:$0xff]  }
 0x3ea   :  { %1655 = vmatprep.subr.bf16.mxu0 %v2549_v36  ;;  %v2644_v36 = vld [vmem:[#allocation10 + $0x60] sm:$0xff]  }
 0x3ed   :  { %1656 = vmatpush1.bf16.msra.mxu0 %v2547_v37  ;;  %v2645_v37 = vld [vmem:[#allocation10 + $0xe0] sm:$0xff]  }
 0x3ee   :  { %1657 = vmatprep.subr.bf16.mxu0 %v2555_v38  ;;  %v2646_v38 = vld [vmem:[#allocation10 + $0x20] sm:$0xff]  }
 0x3f1   :  { %1658 = vmatpush1.bf16.msra.mxu0 %v2553_v39  ;;  %v2647_v39 = vld [vmem:[#allocation10 + $0xa0] sm:$0xff]  }
 0x3f2   :  { %1659 = vmatprep.subr.bf16.mxu0 %v2561_v40  ;;  %v2648_v40 = vld [vmem:[#allocation10 + $0x68] sm:$0xff]  }
 0x3f5   :  { %1660 = vmatpush1.bf16.msra.mxu0 %v2559_v41  ;;  %v2649_v41 = vld [vmem:[#allocation10 + $0xe8] sm:$0xff]  }
 0x3f6   :  { %1661 = vmatprep.subr.bf16.mxu0 %v2567_v42  ;;  %v2650_v42 = vld [vmem:[#allocation10 + $0x28] sm:$0xff]  }
 0x3f9   :  { %1662 = vmatpush1.bf16.msra.mxu0 %v2565_v43  ;;  %v2651_v43 = vld [vmem:[#allocation10 + $0xa8] sm:$0xff]  }
 0x3fa   :  { %1663 = vmatprep.subr.bf16.mxu0 %v2573_v44  ;;  %v2652_v44 = vld [vmem:[#allocation10 + $0x70] sm:$0xff]  }
 0x3fd   :  { %1664 = vmatpush1.bf16.msra.mxu0 %v2571_v45  ;;  %v2653_v45 = vld [vmem:[#allocation10 + $0xf0] sm:$0xff]  }
 0x3fe   :  { %1665 = vmatprep.subr.bf16.mxu0 %v2579_v46  ;;  %v2654_v46 = vld [vmem:[#allocation10 + $0x30] sm:$0xff]  }
 0x401   :  { %1666 = vmatpush1.bf16.msra.mxu0 %v2577_v47  ;;  %v2655_v47 = vld [vmem:[#allocation10 + $0xb0] sm:$0xff]  }
 0x402   :  { %1667 = vmatprep.subr.bf16.mxu0 %v2585_v48  ;;  %v2656_v48 = vld [vmem:[#allocation10 + $0x78] sm:$0xff]  }
 0x405   :  { %1668 = vmatpush1.bf16.msra.mxu0 %v2583_v49  ;;  %v2657_v49 = vld [vmem:[#allocation10 + $0xf8] sm:$0xff]  }
 0x406   :  { %1669 = vmatprep.subr.bf16.mxu0 %v2591_v50  ;;  %v2658_v50 = vld [vmem:[#allocation10 + $0x38] sm:$0xff]  }
 0x409   :  { %1670 = vmatpush1.bf16.msra.mxu0 %v2589_v51  ;;  %v2659_v51 = vld [vmem:[#allocation10 + $0xb8] sm:$0xff]  }
 0x40a   :  { %1671 = vmatprep.subr.bf16.mxu0 %v2597_v52  ;;  %v1280_v52 = vsub.s32 2, %v2997_v3 }
 0x40d   :  { %1672 = vmatpush1.bf16.msra.mxu0 %v2595_v53  ;;  %v1268_v53 = vld [vmem:[%s3055_s12] sm:$0xf] }
 0x40e   :  { %1673 = vmatprep.subr.bf16.mxu0 %v2603_v54  ;;  %v1284_v54 = vsub.s32 3, %v2997_v3 }
 0x411   :  { %1674 = vmatpush1.bf16.msra.mxu0 %v2601_v55  ;;  %v1273_v55 = vrot.slane %v1268_v53, %v3000_v4 }
 0x412   :  { %1675 = vmatprep.subr.bf16.mxu0 %v2609_v56  ;;  %v1281_v56 = vrot.slane %v1268_v53, %v1280_v52 }
 0x415   :  { %1676 = vmatpush1.bf16.msra.mxu0 %v2607_v57  ;;  %v1277_v57 = vrot.slane %v1268_v53, %v3006_v6 }
 0x416   :  { %1677 = vmatprep.subr.bf16.mxu0 %v2615_v58  ;;  %v1285_v58 = vrot.slane %v1268_v53, %v1284_v54 }
 0x419   :  { %1678 = vmatpush1.bf16.msra.mxu0 %v2613_v59 }
 0x41a   :  { %1679 = vmatprep.subr.bf16.mxu0 %v2621_v61 }
 0x41d   :  { %1680 = vmatpush1.bf16.msra.mxu0 %v2619_v63 }
 0x41e   :  { %1681 = vmatprep.subr.bf16.mxu0 %v2627_v1 }
 0x421   :  { %1682 = vmatpush1.bf16.msra.mxu0 %v2625_v5 }
 0x422   :  { %2303 = vmatprep.subr.bf16.mxu0 %v2629_v8 }
 0x4b7   :  { %v1193_v12 = vpop.f32.mrb[8].mxu0 }
 0x4b8   :  { %v1194_v13 = vadd.f32 %v1193_v12, %v992_v10  ;;  %v1195_v14 = vpop.f32.mrb[9].mxu0 }
 0x4b9   :  { %v1196_v15 = vadd.f32 %v1195_v14, %v996_v11  ;;  %v1197_v16 = vpop.f32.mrb[10].mxu0 }
 0x4ba   :  { %v1200_v17 = vmax.f32 %v1194_v13, 0.0  ;;  %v1198_v18 = vpop.f32.mrb[11].mxu0 }
 0x4bb   :  { %v1201_v19 = vmax.f32 %v1196_v15, 0.0 }
 0x4bc   :  { %v1202_v23 = vpack.c.bf16 %v1200_v17, %v1200_v17  ;;  %v2248_v17 = vld [vmem:[%s3057_s14] ss:$0 sm:$0xff] }
 0x4bd   :  { %v1203_v20 = vpack.c.bf16 %v1201_v19, %v1201_v19 }
 0x4bf   :  { %1642 = vmatprep.mubr.bf16.mxu1 %v1203_v20  ;;  %1683 = vmatprep.mubr.bf16.mxu0 %v1203_v20 }
 0x4c0   :  { %1643 = vmatmul.mubr.bf16.vlgmr.msra.gmra.mrb[8].mxu1 %v1202_v23  ;;  %1684 = vmatmul.mubr.bf16.vlgmr.msra.gmra.mrb[12].mxu0 %v1202_v23 }
 0x4c1   :  { %2282 = vmatpush3.bf16.msra.mxu1 %v2630_v21  ;;  %2304 = vmatpush3.bf16.msra.mxu0 %v2631_v22 }
 0x4c2   :  { %2283 = vmatprep.subr.bf16.mxu1 %v2632_v24  ;;  %2305 = vmatprep.subr.bf16.mxu0 %v2633_v25 }
 0x4c5   :  { %2284 = vmatpush3.bf16.msra.mxu1 %v2634_v26  ;;  %2306 = vmatpush3.bf16.msra.mxu0 %v2635_v27 }
 0x4c6   :  { %2285 = vmatprep.subr.bf16.mxu1 %v2636_v28  ;;  %2307 = vmatprep.subr.bf16.mxu0 %v2637_v29 }
 0x4c9   :  { %2286 = vmatpush3.bf16.msra.mxu1 %v2638_v30  ;;  %2308 = vmatpush3.bf16.msra.mxu0 %v2639_v31 }
 0x4ca   :  { %2287 = vmatprep.subr.bf16.mxu1 %v2640_v32  ;;  %2309 = vmatprep.subr.bf16.mxu0 %v2641_v33 }
 0x4cd   :  { %2288 = vmatpush3.bf16.msra.mxu1 %v2642_v34  ;;  %2310 = vmatpush3.bf16.msra.mxu0 %v2643_v35 }
 0x4ce   :  { %2289 = vmatprep.subr.bf16.mxu1 %v2644_v36  ;;  %2311 = vmatprep.subr.bf16.mxu0 %v2645_v37 }
 0x4d1   :  { %2290 = vmatpush3.bf16.msra.mxu1 %v2646_v38  ;;  %2312 = vmatpush3.bf16.msra.mxu0 %v2647_v39 }
 0x4d2   :  { %2291 = vmatprep.subr.bf16.mxu1 %v2648_v40  ;;  %2313 = vmatprep.subr.bf16.mxu0 %v2649_v41 }
 0x4d5   :  { %2292 = vmatpush3.bf16.msra.mxu1 %v2650_v42  ;;  %2314 = vmatpush3.bf16.msra.mxu0 %v2651_v43 }
 0x4d6   :  { %2293 = vmatprep.subr.bf16.mxu1 %v2652_v44  ;;  %2315 = vmatprep.subr.bf16.mxu0 %v2653_v45 }
 0x4d9   :  { %2294 = vmatpush3.bf16.msra.mxu1 %v2654_v46  ;;  %2316 = vmatpush3.bf16.msra.mxu0 %v2655_v47 }
 0x4da   :  { %2295 = vmatprep.subr.bf16.mxu1 %v2656_v48  ;;  %2317 = vmatprep.subr.bf16.mxu0 %v2657_v49 }
 0x4dd   :  { %2296 = vmatpush3.bf16.msra.mxu1 %v2658_v50  ;;  %2318 = vmatpush3.bf16.msra.mxu0 %v2659_v51 }
 0x593   :  { %v1644_v59 = vpop.f32.mrb[8].mxu1  ;;  %v1685_v60 = vpop.f32.mrb[12].mxu0 }
 0x594   :  { %v1645_v61 = vadd.f32 %v1644_v59, %v1273_v55  ;;  %v1686_v62 = vadd.f32 %v1685_v60, %v1281_v56  ;;  %v1646_v63 = vpop.f32.mrb[9].mxu1  ;;  %v1687_v0 = vpop.f32.mrb[13].mxu0 }
 0x595   :  { %v1647_v1 = vadd.f32 %v1646_v63, %v1277_v57  ;;  %v1688_v2 = vadd.f32 %v1687_v0, %v1285_v58  ;;  %v1648_v5 = vpop.f32.mrb[10].mxu1  ;;  %v1689_v7 = vpop.f32.mrb[14].mxu0 }
 0x596   :  { %v1692_v8 = vmax.f32 %v1645_v61, 0.0  ;;  %v1694_v9 = vmax.f32 %v1686_v62, 0.0  ;;  %v1649_v10 = vpop.f32.mrb[11].mxu1  ;;  %v1690_v3 = vpop.f32.mrb[15].mxu0 }
 0x597   :  { %v1693_v11 = vmax.f32 %v1647_v1, 0.0  ;;  %v1695_v4 = vmax.f32 %v1688_v2, 0.0 }
 0x598   :  { %v1696_v6 = vpack.c.bf16 %v1692_v8, %v1692_v8  ;;  %v1698_v14 = vpack.c.bf16 %v1694_v9, %v1694_v9 }
 0x599   :  { %v1697_v12 = vpack.c.bf16 %v1693_v11, %v1693_v11  ;;  %v1699_v13 = vpack.c.bf16 %v1695_v4, %v1695_v4 }
 0x59b   :  { %1995 = vmatprep.mubr.bf16.mxu1 %v1697_v12  ;;  %2035 = vmatprep.mubr.bf16.mxu0 %v1699_v13 }
 0x59c   :  { %1996 = vmatmul.mubr.bf16.vlgmr.msra.gmra.mrb[12].mxu1 %v1696_v6  ;;  %2036 = vmatmul.mubr.bf16.vlgmr.msra.gmra.mrb[16].mxu0 %v1698_v14 }
 0x66f   :  { %v2297_v15 = vpop.f32.mrb[12].mxu1  ;;  %v2319_v16 = vpop.f32.mrb[16].mxu0 }
 0x670   :  { %v2298_v18 = vpop.f32.mrb[13].mxu1  ;;  %v2320_v19 = vpop.f32.mrb[17].mxu0 }
 0x671   :  { %v2299_v20 = vadd.f32 %v2298_v18, %v2297_v15  ;;  %v2321_v21 = vadd.f32 %v2320_v19, %v2319_v16  ;;  %v2300_v22 = vpop.f32.mrb[14].mxu1  ;;  %v2322_v23 = vpop.f32.mrb[18].mxu0 }
 0x672   :  { %v2301_v24 = vpop.f32.mrb[15].mxu1  ;;  %v2323_v25 = vpop.f32.mrb[19].mxu0 }
 0x673   :  { %v1998_v26 = vadd.f32 %v2299_v20, %v2248_v17 }
 0x675   :  { %v2038_v27 = vadd.f32 %v2321_v21, %v1998_v26 }
 0x677   :  { %2043 = vst [vmem:[%s3058_s15] sm:$0xff] %v2038_v27 }
 0x678   :  { %2048 = vsyncpa [#allocation3], 1 }
 0x679   :  { %2049 = vsyncpa [#allocation5], 1 }
 0x67a   :  { %2050 = vsyncpa [#allocation8], 1 }
 0x67b   :  { %2051 = vsyncpa [#allocation11], 1 }

</bundles_post_ra>
